<compile_context>
chip_gen: v5e
topology: v5e:2x2
jax: 0.10.0
libtpu: 0.0.40
codegen_flags: <defaults>
</compile_context>

<pallas_src>
import functools

import jax
import jax.numpy as jnp
from jax import lax
from jax.experimental import pallas as pl
from jax.experimental.pallas import tpu as pltpu

EPS = 1e-5


# ------------------------------- kernel ----------------------------------------
def _floordiv_pow2(a, d):
    """a // d for non-negative int32 vectors; shift when d is a power of two."""
    shift = d.bit_length() - 1
    if (1 << shift) == d:
        return a >> shift
    return a // d  # TODO(synk): general int vector div path (unused in this config)


def _mod_pow2(a, d):
    shift = d.bit_length() - 1
    if (1 << shift) == d:
        return a & (d - 1)
    return a % d


def scconv_kernel(x_ref, pmat_ref, umat_ref,
                  w2_ref, b2_ref, w3_ref, b3_ref, w4_ref, b4_ref,
                  o_ref, *, N, H, W, HP, WP):
    x = x_ref[...]                                   # (Cin, L) f32
    L = x.shape[-1]
    LP = pmat_ref.shape[-1]

    def tap_masks(n_img, h_img, w_img, l_total):
        """9 boolean (1, l_total) masks: tap t of output position p reads a real
        in-image pixel (handles image borders, batch boundaries, lane padding).
        Built in-kernel from iota compares -> no mask DMA from HBM."""
        p = lax.broadcasted_iota(jnp.int32, (1, l_total), 1)
        i = _mod_pow2(_floordiv_pow2(p, w_img), h_img)
        j = _mod_pow2(p, w_img)
        in_range = p < n_img * h_img * w_img
        ms = []
        for dh in (-1, 0, 1):
            row_ok = jnp.logical_and(i + dh >= 0, i + dh < h_img)
            for dw in (-1, 0, 1):
                col_ok = jnp.logical_and(j + dw >= 0, j + dw < w_img)
                ms.append(jnp.logical_and(jnp.logical_and(row_ok, col_ok), in_range))
        return ms

    def conv3x3_bn(src, w_ref, b_ref, masks, w_img):
        """3x3 stride-1 'same' conv + folded-BN shift on a channels-first,
        spatial-on-lanes image batch: 9 lane-rolls (XLU) + mask selects (VPU)
        build the im2col patch as a value, then one bf16 MXU matmul K=9*Cin."""
        l_img = src.shape[-1]
        taps = []
        for kh in range(3):
            for kw in range(3):
                t = kh * 3 + kw
                s = (kh - 1) * w_img + (kw - 1)           # flat source offset
                rolled = pltpu.roll(src, (-s) % l_img, 1) if s else src
                taps.append(jnp.where(masks[t], rolled, 0.0))
        patch = jnp.concatenate(taps, axis=0).astype(jnp.bfloat16)  # (9*Cin, l_img)
        acc = jnp.dot(w_ref[...], patch, preferred_element_type=jnp.float32)
        return acc + b_ref[...]                           # per-channel BN shift (f32)

    masks_full = tap_masks(N, H, W, L)
    masks_pool = tap_masks(N, HP, WP, LP)

    # ---- k2 branch: sum-pool(r) [1/r^2 folded into w2] -> Conv3x3 -> BN -> upsample
    pooled = jnp.dot(x.astype(jnp.bfloat16), pmat_ref[...],
                     preferred_element_type=jnp.float32)            # (Cin, LP)
    k2 = conv3x3_bn(pooled, w2_ref, b2_ref, masks_pool, WP)          # (Cin, LP)
    up = jnp.dot(k2.astype(jnp.bfloat16), umat_ref[...],
                 preferred_element_type=jnp.float32)                 # (Cin, L)

    gate = jax.nn.sigmoid(x + up)                     # f32 identity-add + EUP sigmoid

    # ---- k3 branch: Conv3x3 -> BN, modulate by the gate ------------------------
    k3 = conv3x3_bn(x, w3_ref, b3_ref, masks_full, W)
    fused = k3 * gate

    # ---- k4: Conv3x3 (Cin -> Cout) -> BN ---------------------------------------
    o_ref[...] = conv3x3_bn(fused, w4_ref, b4_ref, masks_full, W)


# ------------------------------ wrapper -----------------------------------------
def _fold_conv_bn(w_hwio, scale, shift):
    """(3,3,Cin,Cout) HWIO conv weight + BN(scale, shift) -> bf16 (Cout, 9*Cin)
    matmul weight with the BN scale folded in, plus an f32 (Cout, 1) shift."""
    cout = w_hwio.shape[-1]
    wmat = jnp.transpose(w_hwio, (3, 0, 1, 2)).reshape(cout, -1)  # [co, (kh*3+kw)*Cin+ci]
    wmat = wmat * scale[:, None]
    return wmat.astype(jnp.bfloat16), shift.reshape(cout, 1).astype(jnp.float32)


def _pool_matrices(N, H, W, r, lp):
    """{0,1} bf16 matrices (exact in bf16): pmat (N*H*W, lp) sum-pool one-hot
    (the 1/r^2 is folded into w2's scale); umat = pmat.T nearest-upsample.
    Columns/rows >= N*(H//r)*(W//r) are zero (lane padding of the pooled layout)."""
    hp, wp = H // r, W // r
    p = jnp.arange(N * H * W)
    n, rem = p // (H * W), p % (H * W)
    i, j = rem // W, rem % W
    cell = n * (hp * wp) + (i // r) * wp + (j // r)               # (L,)
    onehot = (cell[:, None] == jnp.arange(lp)[None, :]).astype(jnp.bfloat16)
    return onehot, onehot.T


def scconv_block1(x_nchw, params, *, pooling_r):
    N, Cin, H, W = x_nchw.shape
    r = pooling_r
    assert H % r == 0 and W % r == 0
    hp, wp = H // r, W // r
    L = N * H * W
    assert L % 128 == 0, "flattened batch*spatial length must be lane (128) aligned"
    LP = max(128, -(-(N * hp * wp) // 128) * 128)                 # lane-padded pooled length
    Cout = params["w4"].shape[-1]

    # Fold 1/r^2 of the average pool into w2's folded-BN scale (shift unchanged).
    w2, b2 = _fold_conv_bn(params["w2"], params["s2"] / (r * r), params["b2"])
    w3, b3 = _fold_conv_bn(params["w3"], params["s3"], params["b3"])
    w4, b4 = _fold_conv_bn(params["w4"], params["s4"], params["b4"])
    pmat, umat = _pool_matrices(N, H, W, r, LP)

    # NCHW -> channels-first with batch*spatial flattened on lanes: (Cin, N*H*W)
    x_flat = jnp.transpose(x_nchw, (1, 0, 2, 3)).reshape(Cin, L)

    kernel = functools.partial(scconv_kernel, N=N, H=H, W=W, HP=hp, WP=wp)
    vmem = lambda: pl.BlockSpec(memory_space=pltpu.MemorySpace.VMEM)

    # Whole problem in a single grid step: the kernel is ~1-2 us, so any grid
    # split would be pure per-step overhead on single-TensorCore chips.
    out_flat = pl.pallas_call(
        kernel,
        out_shape=jax.ShapeDtypeStruct((Cout, L), jnp.float32),
        in_specs=[vmem() for _ in range(9)],
        out_specs=vmem(),
    )(x_flat, pmat, umat, w2, b2, w3, b3, w4, b4)

    return jnp.transpose(out_flat.reshape(Cout, N, H, W), (1, 0, 2, 3))   # -> NCHW


# -------------------------- parameters (deterministic) ---------------------------
def init_params(key, inplanes, planes):
    ks = jax.random.split(key, 6)

    def conv_w(k, cin, cout):
        return jax.random.normal(k, (3, 3, cin, cout), jnp.float32) * 0.1

    def bn(k, c):
        k1, k2, k3, k4 = jax.random.split(k, 4)
        gamma = 1.0 + 0.1 * jax.random.normal(k1, (c,), jnp.float32)
        beta = 0.1 * jax.random.normal(k2, (c,), jnp.float32)
        mean = 0.1 * jax.random.normal(k3, (c,), jnp.float32)
        var = 1.0 + 0.5 * jax.random.uniform(k4, (c,), jnp.float32)
        scale = gamma / jnp.sqrt(var + EPS)
        shift = beta - mean * scale
        return scale, shift

    w2 = conv_w(ks[0], inplanes, inplanes); s2, b2 = bn(ks[1], inplanes)
    w3 = conv_w(ks[2], inplanes, inplanes); s3, b3 = bn(ks[3], inplanes)
    w4 = conv_w(ks[4], inplanes, planes);   s4, b4 = bn(ks[5], planes)
    return dict(w2=w2, s2=s2, b2=b2, w3=w3, s3=s3, b3=b3, w4=w4, s4=s4, b4=b4)


# -------------------------- pure-JAX reference (NCHW) ----------------------------
def _conv_bn_ref(x, w, scale, shift):
    y = lax.conv_general_dilated(x, w, (1, 1), ((1, 1), (1, 1)),
                                 dimension_numbers=("NCHW", "HWIO", "NCHW"),
                                 precision=lax.Precision.HIGHEST)
    return y * scale[None, :, None, None] + shift[None, :, None, None]


def reference_forward(x, p, r):
    N, C, H, W = x.shape
    pooled = x.reshape(N, C, H // r, r, W // r, r).mean(axis=(3, 5))
    k2 = _conv_bn_ref(pooled, p["w2"], p["s2"], p["b2"])
    up = jnp.repeat(jnp.repeat(k2, r, axis=2), r, axis=3)          # nearest upsample
    gate = jax.nn.sigmoid(x + up)
    k3 = _conv_bn_ref(x, p["w3"], p["s3"], p["b3"])
    return _conv_bn_ref(k3 * gate, p["w4"], p["s4"], p["b4"])


if __name__ == "__main__":
    INPLANES, PLANES = 4, 8
    POOLING_R = 4
    N, H, W = 2, 16, 16

    key = jax.random.PRNGKey(0)
    kx, kp = jax.random.split(key)
    x = jax.random.normal(kx, (N, INPLANES, H, W), jnp.float32)    # NCHW, like PyTorch
    params = init_params(kp, INPLANES, PLANES)

    out = jax.block_until_ready(scconv_block1(x, params, pooling_r=POOLING_R))
    ref = jax.block_until_ready(reference_forward(x, params, POOLING_R))

    assert out.shape == (N, PLANES, H, W)
    max_err = float(jnp.max(jnp.abs(out - ref)))
    # Tolerance covers explicit bf16 MXU operands (per perf review) vs the
    # HIGHEST-precision f32 reference.
    assert jnp.allclose(out, ref, atol=1e-2, rtol=1e-2), max_err
    print("KERNEL_OK")
</pallas_src>

<mosaic_0001>
module attributes {stable_mosaic.version = 11 : i64} {
  func.func @scconv_kernel(%arg0: memref<4x512xf32, #tpu.memory_space<vmem>>, %arg1: memref<512x128xbf16, #tpu.memory_space<vmem>>, %arg2: memref<128x512xbf16, #tpu.memory_space<vmem>>, %arg3: memref<4x36xbf16, #tpu.memory_space<vmem>>, %arg4: memref<4x1xf32, #tpu.memory_space<vmem>>, %arg5: memref<4x36xbf16, #tpu.memory_space<vmem>>, %arg6: memref<4x1xf32, #tpu.memory_space<vmem>>, %arg7: memref<8x36xbf16, #tpu.memory_space<vmem>>, %arg8: memref<8x1xf32, #tpu.memory_space<vmem>>, %arg9: memref<8x512xf32, #tpu.memory_space<vmem>>) attributes {dimension_semantics = [], scalar_prefetch = 0 : i64, scratch_operands = 0 : i64, tpu.core_type = #tpu.core_type<tc>} {
    %c0 = arith.constant 0 : index
    %c0_0 = arith.constant 0 : index
    %0 = vector.load %arg0[%c0, %c0_0] : memref<4x512xf32, #tpu.memory_space<vmem>>, vector<4x512xf32>
    %1 = tpu.iota {dimensions = array<i32: 1>} : vector<1x512xi32>
    %c4_i32 = arith.constant 4 : i32
    %2 = vector.broadcast %c4_i32 : i32 to vector<1x512xi32>
    %3 = arith.shrsi %1, %2 : vector<1x512xi32>
    %c15_i32 = arith.constant 15 : i32
    %4 = vector.broadcast %c15_i32 : i32 to vector<1x512xi32>
    %5 = arith.andi %3, %4 : vector<1x512xi32>
    %c15_i32_1 = arith.constant 15 : i32
    %6 = vector.broadcast %c15_i32_1 : i32 to vector<1x512xi32>
    %7 = arith.andi %1, %6 : vector<1x512xi32>
    %c512_i32 = arith.constant 512 : i32
    %8 = vector.broadcast %c512_i32 : i32 to vector<1x512xi32>
    %9 = arith.cmpi slt, %1, %8 : vector<1x512xi32>
    %c-1_i32 = arith.constant -1 : i32
    %10 = vector.broadcast %c-1_i32 : i32 to vector<1x512xi32>
    %11 = arith.addi %5, %10 : vector<1x512xi32>
    %c0_i32 = arith.constant 0 : i32
    %12 = vector.broadcast %c0_i32 : i32 to vector<1x512xi32>
    %13 = arith.cmpi sge, %11, %12 : vector<1x512xi32>
    %c-1_i32_2 = arith.constant -1 : i32
    %14 = vector.broadcast %c-1_i32_2 : i32 to vector<1x512xi32>
    %15 = arith.addi %5, %14 : vector<1x512xi32>
    %c16_i32 = arith.constant 16 : i32
    %16 = vector.broadcast %c16_i32 : i32 to vector<1x512xi32>
    %17 = arith.cmpi slt, %15, %16 : vector<1x512xi32>
    %18 = arith.andi %13, %17 : vector<1x512xi1>
    %c-1_i32_3 = arith.constant -1 : i32
    %19 = vector.broadcast %c-1_i32_3 : i32 to vector<1x512xi32>
    %20 = arith.addi %7, %19 : vector<1x512xi32>
    %c0_i32_4 = arith.constant 0 : i32
    %21 = vector.broadcast %c0_i32_4 : i32 to vector<1x512xi32>
    %22 = arith.cmpi sge, %20, %21 : vector<1x512xi32>
    %c-1_i32_5 = arith.constant -1 : i32
    %23 = vector.broadcast %c-1_i32_5 : i32 to vector<1x512xi32>
    %24 = arith.addi %7, %23 : vector<1x512xi32>
    %c16_i32_6 = arith.constant 16 : i32
    %25 = vector.broadcast %c16_i32_6 : i32 to vector<1x512xi32>
    %26 = arith.cmpi slt, %24, %25 : vector<1x512xi32>
    %27 = arith.andi %22, %26 : vector<1x512xi1>
    %28 = arith.andi %18, %27 : vector<1x512xi1>
    %29 = arith.andi %28, %9 : vector<1x512xi1>
    %c0_i32_7 = arith.constant 0 : i32
    %30 = vector.broadcast %c0_i32_7 : i32 to vector<1x512xi32>
    %31 = arith.addi %7, %30 : vector<1x512xi32>
    %c0_i32_8 = arith.constant 0 : i32
    %32 = vector.broadcast %c0_i32_8 : i32 to vector<1x512xi32>
    %33 = arith.cmpi sge, %31, %32 : vector<1x512xi32>
    %c0_i32_9 = arith.constant 0 : i32
    %34 = vector.broadcast %c0_i32_9 : i32 to vector<1x512xi32>
    %35 = arith.addi %7, %34 : vector<1x512xi32>
    %c16_i32_10 = arith.constant 16 : i32
    %36 = vector.broadcast %c16_i32_10 : i32 to vector<1x512xi32>
    %37 = arith.cmpi slt, %35, %36 : vector<1x512xi32>
    %38 = arith.andi %33, %37 : vector<1x512xi1>
    %39 = arith.andi %18, %38 : vector<1x512xi1>
    %40 = arith.andi %39, %9 : vector<1x512xi1>
    %c1_i32 = arith.constant 1 : i32
    %41 = vector.broadcast %c1_i32 : i32 to vector<1x512xi32>
    %42 = arith.addi %7, %41 : vector<1x512xi32>
    %c0_i32_11 = arith.constant 0 : i32
    %43 = vector.broadcast %c0_i32_11 : i32 to vector<1x512xi32>
    %44 = arith.cmpi sge, %42, %43 : vector<1x512xi32>
    %c1_i32_12 = arith.constant 1 : i32
    %45 = vector.broadcast %c1_i32_12 : i32 to vector<1x512xi32>
    %46 = arith.addi %7, %45 : vector<1x512xi32>
    %c16_i32_13 = arith.constant 16 : i32
    %47 = vector.broadcast %c16_i32_13 : i32 to vector<1x512xi32>
    %48 = arith.cmpi slt, %46, %47 : vector<1x512xi32>
    %49 = arith.andi %44, %48 : vector<1x512xi1>
    %50 = arith.andi %18, %49 : vector<1x512xi1>
    %51 = arith.andi %50, %9 : vector<1x512xi1>
    %c0_i32_14 = arith.constant 0 : i32
    %52 = vector.broadcast %c0_i32_14 : i32 to vector<1x512xi32>
    %53 = arith.addi %5, %52 : vector<1x512xi32>
    %c0_i32_15 = arith.constant 0 : i32
    %54 = vector.broadcast %c0_i32_15 : i32 to vector<1x512xi32>
    %55 = arith.cmpi sge, %53, %54 : vector<1x512xi32>
    %c0_i32_16 = arith.constant 0 : i32
    %56 = vector.broadcast %c0_i32_16 : i32 to vector<1x512xi32>
    %57 = arith.addi %5, %56 : vector<1x512xi32>
    %c16_i32_17 = arith.constant 16 : i32
    %58 = vector.broadcast %c16_i32_17 : i32 to vector<1x512xi32>
    %59 = arith.cmpi slt, %57, %58 : vector<1x512xi32>
    %60 = arith.andi %55, %59 : vector<1x512xi1>
    %c-1_i32_18 = arith.constant -1 : i32
    %61 = vector.broadcast %c-1_i32_18 : i32 to vector<1x512xi32>
    %62 = arith.addi %7, %61 : vector<1x512xi32>
    %c0_i32_19 = arith.constant 0 : i32
    %63 = vector.broadcast %c0_i32_19 : i32 to vector<1x512xi32>
    %64 = arith.cmpi sge, %62, %63 : vector<1x512xi32>
    %c-1_i32_20 = arith.constant -1 : i32
    %65 = vector.broadcast %c-1_i32_20 : i32 to vector<1x512xi32>
    %66 = arith.addi %7, %65 : vector<1x512xi32>
    %c16_i32_21 = arith.constant 16 : i32
    %67 = vector.broadcast %c16_i32_21 : i32 to vector<1x512xi32>
    %68 = arith.cmpi slt, %66, %67 : vector<1x512xi32>
    %69 = arith.andi %64, %68 : vector<1x512xi1>
    %70 = arith.andi %60, %69 : vector<1x512xi1>
    %71 = arith.andi %70, %9 : vector<1x512xi1>
    %c0_i32_22 = arith.constant 0 : i32
    %72 = vector.broadcast %c0_i32_22 : i32 to vector<1x512xi32>
    %73 = arith.addi %7, %72 : vector<1x512xi32>
    %c0_i32_23 = arith.constant 0 : i32
    %74 = vector.broadcast %c0_i32_23 : i32 to vector<1x512xi32>
    %75 = arith.cmpi sge, %73, %74 : vector<1x512xi32>
    %c0_i32_24 = arith.constant 0 : i32
    %76 = vector.broadcast %c0_i32_24 : i32 to vector<1x512xi32>
    %77 = arith.addi %7, %76 : vector<1x512xi32>
    %c16_i32_25 = arith.constant 16 : i32
    %78 = vector.broadcast %c16_i32_25 : i32 to vector<1x512xi32>
    %79 = arith.cmpi slt, %77, %78 : vector<1x512xi32>
    %80 = arith.andi %75, %79 : vector<1x512xi1>
    %81 = arith.andi %60, %80 : vector<1x512xi1>
    %82 = arith.andi %81, %9 : vector<1x512xi1>
    %c1_i32_26 = arith.constant 1 : i32
    %83 = vector.broadcast %c1_i32_26 : i32 to vector<1x512xi32>
    %84 = arith.addi %7, %83 : vector<1x512xi32>
    %c0_i32_27 = arith.constant 0 : i32
    %85 = vector.broadcast %c0_i32_27 : i32 to vector<1x512xi32>
    %86 = arith.cmpi sge, %84, %85 : vector<1x512xi32>
    %c1_i32_28 = arith.constant 1 : i32
    %87 = vector.broadcast %c1_i32_28 : i32 to vector<1x512xi32>
    %88 = arith.addi %7, %87 : vector<1x512xi32>
    %c16_i32_29 = arith.constant 16 : i32
    %89 = vector.broadcast %c16_i32_29 : i32 to vector<1x512xi32>
    %90 = arith.cmpi slt, %88, %89 : vector<1x512xi32>
    %91 = arith.andi %86, %90 : vector<1x512xi1>
    %92 = arith.andi %60, %91 : vector<1x512xi1>
    %93 = arith.andi %92, %9 : vector<1x512xi1>
    %c1_i32_30 = arith.constant 1 : i32
    %94 = vector.broadcast %c1_i32_30 : i32 to vector<1x512xi32>
    %95 = arith.addi %5, %94 : vector<1x512xi32>
    %c0_i32_31 = arith.constant 0 : i32
    %96 = vector.broadcast %c0_i32_31 : i32 to vector<1x512xi32>
    %97 = arith.cmpi sge, %95, %96 : vector<1x512xi32>
    %c1_i32_32 = arith.constant 1 : i32
    %98 = vector.broadcast %c1_i32_32 : i32 to vector<1x512xi32>
    %99 = arith.addi %5, %98 : vector<1x512xi32>
    %c16_i32_33 = arith.constant 16 : i32
    %100 = vector.broadcast %c16_i32_33 : i32 to vector<1x512xi32>
    %101 = arith.cmpi slt, %99, %100 : vector<1x512xi32>
    %102 = arith.andi %97, %101 : vector<1x512xi1>
    %c-1_i32_34 = arith.constant -1 : i32
    %103 = vector.broadcast %c-1_i32_34 : i32 to vector<1x512xi32>
    %104 = arith.addi %7, %103 : vector<1x512xi32>
    %c0_i32_35 = arith.constant 0 : i32
    %105 = vector.broadcast %c0_i32_35 : i32 to vector<1x512xi32>
    %106 = arith.cmpi sge, %104, %105 : vector<1x512xi32>
    %c-1_i32_36 = arith.constant -1 : i32
    %107 = vector.broadcast %c-1_i32_36 : i32 to vector<1x512xi32>
    %108 = arith.addi %7, %107 : vector<1x512xi32>
    %c16_i32_37 = arith.constant 16 : i32
    %109 = vector.broadcast %c16_i32_37 : i32 to vector<1x512xi32>
    %110 = arith.cmpi slt, %108, %109 : vector<1x512xi32>
    %111 = arith.andi %106, %110 : vector<1x512xi1>
    %112 = arith.andi %102, %111 : vector<1x512xi1>
    %113 = arith.andi %112, %9 : vector<1x512xi1>
    %c0_i32_38 = arith.constant 0 : i32
    %114 = vector.broadcast %c0_i32_38 : i32 to vector<1x512xi32>
    %115 = arith.addi %7, %114 : vector<1x512xi32>
    %c0_i32_39 = arith.constant 0 : i32
    %116 = vector.broadcast %c0_i32_39 : i32 to vector<1x512xi32>
    %117 = arith.cmpi sge, %115, %116 : vector<1x512xi32>
    %c0_i32_40 = arith.constant 0 : i32
    %118 = vector.broadcast %c0_i32_40 : i32 to vector<1x512xi32>
    %119 = arith.addi %7, %118 : vector<1x512xi32>
    %c16_i32_41 = arith.constant 16 : i32
    %120 = vector.broadcast %c16_i32_41 : i32 to vector<1x512xi32>
    %121 = arith.cmpi slt, %119, %120 : vector<1x512xi32>
    %122 = arith.andi %117, %121 : vector<1x512xi1>
    %123 = arith.andi %102, %122 : vector<1x512xi1>
    %124 = arith.andi %123, %9 : vector<1x512xi1>
    %c1_i32_42 = arith.constant 1 : i32
    %125 = vector.broadcast %c1_i32_42 : i32 to vector<1x512xi32>
    %126 = arith.addi %7, %125 : vector<1x512xi32>
    %c0_i32_43 = arith.constant 0 : i32
    %127 = vector.broadcast %c0_i32_43 : i32 to vector<1x512xi32>
    %128 = arith.cmpi sge, %126, %127 : vector<1x512xi32>
    %c1_i32_44 = arith.constant 1 : i32
    %129 = vector.broadcast %c1_i32_44 : i32 to vector<1x512xi32>
    %130 = arith.addi %7, %129 : vector<1x512xi32>
    %c16_i32_45 = arith.constant 16 : i32
    %131 = vector.broadcast %c16_i32_45 : i32 to vector<1x512xi32>
    %132 = arith.cmpi slt, %130, %131 : vector<1x512xi32>
    %133 = arith.andi %128, %132 : vector<1x512xi1>
    %134 = arith.andi %102, %133 : vector<1x512xi1>
    %135 = arith.andi %134, %9 : vector<1x512xi1>
    %136 = tpu.iota {dimensions = array<i32: 1>} : vector<1x128xi32>
    %c2_i32 = arith.constant 2 : i32
    %137 = vector.broadcast %c2_i32 : i32 to vector<1x128xi32>
    %138 = arith.shrsi %136, %137 : vector<1x128xi32>
    %c3_i32 = arith.constant 3 : i32
    %139 = vector.broadcast %c3_i32 : i32 to vector<1x128xi32>
    %140 = arith.andi %138, %139 : vector<1x128xi32>
    %c3_i32_46 = arith.constant 3 : i32
    %141 = vector.broadcast %c3_i32_46 : i32 to vector<1x128xi32>
    %142 = arith.andi %136, %141 : vector<1x128xi32>
    %c32_i32 = arith.constant 32 : i32
    %143 = vector.broadcast %c32_i32 : i32 to vector<1x128xi32>
    %144 = arith.cmpi slt, %136, %143 : vector<1x128xi32>
    %c-1_i32_47 = arith.constant -1 : i32
    %145 = vector.broadcast %c-1_i32_47 : i32 to vector<1x128xi32>
    %146 = arith.addi %140, %145 : vector<1x128xi32>
    %c0_i32_48 = arith.constant 0 : i32
    %147 = vector.broadcast %c0_i32_48 : i32 to vector<1x128xi32>
    %148 = arith.cmpi sge, %146, %147 : vector<1x128xi32>
    %c-1_i32_49 = arith.constant -1 : i32
    %149 = vector.broadcast %c-1_i32_49 : i32 to vector<1x128xi32>
    %150 = arith.addi %140, %149 : vector<1x128xi32>
    %c4_i32_50 = arith.constant 4 : i32
    %151 = vector.broadcast %c4_i32_50 : i32 to vector<1x128xi32>
    %152 = arith.cmpi slt, %150, %151 : vector<1x128xi32>
    %153 = arith.andi %148, %152 : vector<1x128xi1>
    %c-1_i32_51 = arith.constant -1 : i32
    %154 = vector.broadcast %c-1_i32_51 : i32 to vector<1x128xi32>
    %155 = arith.addi %142, %154 : vector<1x128xi32>
    %c0_i32_52 = arith.constant 0 : i32
    %156 = vector.broadcast %c0_i32_52 : i32 to vector<1x128xi32>
    %157 = arith.cmpi sge, %155, %156 : vector<1x128xi32>
    %c-1_i32_53 = arith.constant -1 : i32
    %158 = vector.broadcast %c-1_i32_53 : i32 to vector<1x128xi32>
    %159 = arith.addi %142, %158 : vector<1x128xi32>
    %c4_i32_54 = arith.constant 4 : i32
    %160 = vector.broadcast %c4_i32_54 : i32 to vector<1x128xi32>
    %161 = arith.cmpi slt, %159, %160 : vector<1x128xi32>
    %162 = arith.andi %157, %161 : vector<1x128xi1>
    %163 = arith.andi %153, %162 : vector<1x128xi1>
    %164 = arith.andi %163, %144 : vector<1x128xi1>
    %c0_i32_55 = arith.constant 0 : i32
    %165 = vector.broadcast %c0_i32_55 : i32 to vector<1x128xi32>
    %166 = arith.addi %142, %165 : vector<1x128xi32>
    %c0_i32_56 = arith.constant 0 : i32
    %167 = vector.broadcast %c0_i32_56 : i32 to vector<1x128xi32>
    %168 = arith.cmpi sge, %166, %167 : vector<1x128xi32>
    %c0_i32_57 = arith.constant 0 : i32
    %169 = vector.broadcast %c0_i32_57 : i32 to vector<1x128xi32>
    %170 = arith.addi %142, %169 : vector<1x128xi32>
    %c4_i32_58 = arith.constant 4 : i32
    %171 = vector.broadcast %c4_i32_58 : i32 to vector<1x128xi32>
    %172 = arith.cmpi slt, %170, %171 : vector<1x128xi32>
    %173 = arith.andi %168, %172 : vector<1x128xi1>
    %174 = arith.andi %153, %173 : vector<1x128xi1>
    %175 = arith.andi %174, %144 : vector<1x128xi1>
    %c1_i32_59 = arith.constant 1 : i32
    %176 = vector.broadcast %c1_i32_59 : i32 to vector<1x128xi32>
    %177 = arith.addi %142, %176 : vector<1x128xi32>
    %c0_i32_60 = arith.constant 0 : i32
    %178 = vector.broadcast %c0_i32_60 : i32 to vector<1x128xi32>
    %179 = arith.cmpi sge, %177, %178 : vector<1x128xi32>
    %c1_i32_61 = arith.constant 1 : i32
    %180 = vector.broadcast %c1_i32_61 : i32 to vector<1x128xi32>
    %181 = arith.addi %142, %180 : vector<1x128xi32>
    %c4_i32_62 = arith.constant 4 : i32
    %182 = vector.broadcast %c4_i32_62 : i32 to vector<1x128xi32>
    %183 = arith.cmpi slt, %181, %182 : vector<1x128xi32>
    %184 = arith.andi %179, %183 : vector<1x128xi1>
    %185 = arith.andi %153, %184 : vector<1x128xi1>
    %186 = arith.andi %185, %144 : vector<1x128xi1>
    %c0_i32_63 = arith.constant 0 : i32
    %187 = vector.broadcast %c0_i32_63 : i32 to vector<1x128xi32>
    %188 = arith.addi %140, %187 : vector<1x128xi32>
    %c0_i32_64 = arith.constant 0 : i32
    %189 = vector.broadcast %c0_i32_64 : i32 to vector<1x128xi32>
    %190 = arith.cmpi sge, %188, %189 : vector<1x128xi32>
    %c0_i32_65 = arith.constant 0 : i32
    %191 = vector.broadcast %c0_i32_65 : i32 to vector<1x128xi32>
    %192 = arith.addi %140, %191 : vector<1x128xi32>
    %c4_i32_66 = arith.constant 4 : i32
    %193 = vector.broadcast %c4_i32_66 : i32 to vector<1x128xi32>
    %194 = arith.cmpi slt, %192, %193 : vector<1x128xi32>
    %195 = arith.andi %190, %194 : vector<1x128xi1>
    %c-1_i32_67 = arith.constant -1 : i32
    %196 = vector.broadcast %c-1_i32_67 : i32 to vector<1x128xi32>
    %197 = arith.addi %142, %196 : vector<1x128xi32>
    %c0_i32_68 = arith.constant 0 : i32
    %198 = vector.broadcast %c0_i32_68 : i32 to vector<1x128xi32>
    %199 = arith.cmpi sge, %197, %198 : vector<1x128xi32>
    %c-1_i32_69 = arith.constant -1 : i32
    %200 = vector.broadcast %c-1_i32_69 : i32 to vector<1x128xi32>
    %201 = arith.addi %142, %200 : vector<1x128xi32>
    %c4_i32_70 = arith.constant 4 : i32
    %202 = vector.broadcast %c4_i32_70 : i32 to vector<1x128xi32>
    %203 = arith.cmpi slt, %201, %202 : vector<1x128xi32>
    %204 = arith.andi %199, %203 : vector<1x128xi1>
    %205 = arith.andi %195, %204 : vector<1x128xi1>
    %206 = arith.andi %205, %144 : vector<1x128xi1>
    %c0_i32_71 = arith.constant 0 : i32
    %207 = vector.broadcast %c0_i32_71 : i32 to vector<1x128xi32>
    %208 = arith.addi %142, %207 : vector<1x128xi32>
    %c0_i32_72 = arith.constant 0 : i32
    %209 = vector.broadcast %c0_i32_72 : i32 to vector<1x128xi32>
    %210 = arith.cmpi sge, %208, %209 : vector<1x128xi32>
    %c0_i32_73 = arith.constant 0 : i32
    %211 = vector.broadcast %c0_i32_73 : i32 to vector<1x128xi32>
    %212 = arith.addi %142, %211 : vector<1x128xi32>
    %c4_i32_74 = arith.constant 4 : i32
    %213 = vector.broadcast %c4_i32_74 : i32 to vector<1x128xi32>
    %214 = arith.cmpi slt, %212, %213 : vector<1x128xi32>
    %215 = arith.andi %210, %214 : vector<1x128xi1>
    %216 = arith.andi %195, %215 : vector<1x128xi1>
    %217 = arith.andi %216, %144 : vector<1x128xi1>
    %c1_i32_75 = arith.constant 1 : i32
    %218 = vector.broadcast %c1_i32_75 : i32 to vector<1x128xi32>
    %219 = arith.addi %142, %218 : vector<1x128xi32>
    %c0_i32_76 = arith.constant 0 : i32
    %220 = vector.broadcast %c0_i32_76 : i32 to vector<1x128xi32>
    %221 = arith.cmpi sge, %219, %220 : vector<1x128xi32>
    %c1_i32_77 = arith.constant 1 : i32
    %222 = vector.broadcast %c1_i32_77 : i32 to vector<1x128xi32>
    %223 = arith.addi %142, %222 : vector<1x128xi32>
    %c4_i32_78 = arith.constant 4 : i32
    %224 = vector.broadcast %c4_i32_78 : i32 to vector<1x128xi32>
    %225 = arith.cmpi slt, %223, %224 : vector<1x128xi32>
    %226 = arith.andi %221, %225 : vector<1x128xi1>
    %227 = arith.andi %195, %226 : vector<1x128xi1>
    %228 = arith.andi %227, %144 : vector<1x128xi1>
    %c1_i32_79 = arith.constant 1 : i32
    %229 = vector.broadcast %c1_i32_79 : i32 to vector<1x128xi32>
    %230 = arith.addi %140, %229 : vector<1x128xi32>
    %c0_i32_80 = arith.constant 0 : i32
    %231 = vector.broadcast %c0_i32_80 : i32 to vector<1x128xi32>
    %232 = arith.cmpi sge, %230, %231 : vector<1x128xi32>
    %c1_i32_81 = arith.constant 1 : i32
    %233 = vector.broadcast %c1_i32_81 : i32 to vector<1x128xi32>
    %234 = arith.addi %140, %233 : vector<1x128xi32>
    %c4_i32_82 = arith.constant 4 : i32
    %235 = vector.broadcast %c4_i32_82 : i32 to vector<1x128xi32>
    %236 = arith.cmpi slt, %234, %235 : vector<1x128xi32>
    %237 = arith.andi %232, %236 : vector<1x128xi1>
    %c-1_i32_83 = arith.constant -1 : i32
    %238 = vector.broadcast %c-1_i32_83 : i32 to vector<1x128xi32>
    %239 = arith.addi %142, %238 : vector<1x128xi32>
    %c0_i32_84 = arith.constant 0 : i32
    %240 = vector.broadcast %c0_i32_84 : i32 to vector<1x128xi32>
    %241 = arith.cmpi sge, %239, %240 : vector<1x128xi32>
    %c-1_i32_85 = arith.constant -1 : i32
    %242 = vector.broadcast %c-1_i32_85 : i32 to vector<1x128xi32>
    %243 = arith.addi %142, %242 : vector<1x128xi32>
    %c4_i32_86 = arith.constant 4 : i32
    %244 = vector.broadcast %c4_i32_86 : i32 to vector<1x128xi32>
    %245 = arith.cmpi slt, %243, %244 : vector<1x128xi32>
    %246 = arith.andi %241, %245 : vector<1x128xi1>
    %247 = arith.andi %237, %246 : vector<1x128xi1>
    %248 = arith.andi %247, %144 : vector<1x128xi1>
    %c0_i32_87 = arith.constant 0 : i32
    %249 = vector.broadcast %c0_i32_87 : i32 to vector<1x128xi32>
    %250 = arith.addi %142, %249 : vector<1x128xi32>
    %c0_i32_88 = arith.constant 0 : i32
    %251 = vector.broadcast %c0_i32_88 : i32 to vector<1x128xi32>
    %252 = arith.cmpi sge, %250, %251 : vector<1x128xi32>
    %c0_i32_89 = arith.constant 0 : i32
    %253 = vector.broadcast %c0_i32_89 : i32 to vector<1x128xi32>
    %254 = arith.addi %142, %253 : vector<1x128xi32>
    %c4_i32_90 = arith.constant 4 : i32
    %255 = vector.broadcast %c4_i32_90 : i32 to vector<1x128xi32>
    %256 = arith.cmpi slt, %254, %255 : vector<1x128xi32>
    %257 = arith.andi %252, %256 : vector<1x128xi1>
    %258 = arith.andi %237, %257 : vector<1x128xi1>
    %259 = arith.andi %258, %144 : vector<1x128xi1>
    %c1_i32_91 = arith.constant 1 : i32
    %260 = vector.broadcast %c1_i32_91 : i32 to vector<1x128xi32>
    %261 = arith.addi %142, %260 : vector<1x128xi32>
    %c0_i32_92 = arith.constant 0 : i32
    %262 = vector.broadcast %c0_i32_92 : i32 to vector<1x128xi32>
    %263 = arith.cmpi sge, %261, %262 : vector<1x128xi32>
    %c1_i32_93 = arith.constant 1 : i32
    %264 = vector.broadcast %c1_i32_93 : i32 to vector<1x128xi32>
    %265 = arith.addi %142, %264 : vector<1x128xi32>
    %c4_i32_94 = arith.constant 4 : i32
    %266 = vector.broadcast %c4_i32_94 : i32 to vector<1x128xi32>
    %267 = arith.cmpi slt, %265, %266 : vector<1x128xi32>
    %268 = arith.andi %263, %267 : vector<1x128xi1>
    %269 = arith.andi %237, %268 : vector<1x128xi1>
    %270 = arith.andi %269, %144 : vector<1x128xi1>
    %271 = arith.truncf %0 : vector<4x512xf32> to vector<4x512xbf16>
    %c0_95 = arith.constant 0 : index
    %c0_96 = arith.constant 0 : index
    %272 = vector.load %arg1[%c0_95, %c0_96] : memref<512x128xbf16, #tpu.memory_space<vmem>>, vector<512x128xbf16>
    %cst = arith.constant dense<0.000000e+00> : vector<4x128xf32>
    %273 = tpu.matmul %271, %272, %cst {dimension_numbers = #tpu.dot_dimension_numbers<[1], [0], [0], [1], [0, 0, 1, 1], [], []>} : vector<4x512xbf16>, vector<512x128xbf16>, vector<4x128xf32> -> vector<4x128xf32>
    %c5_i32 = arith.constant 5 : i32
    %274 = tpu.dynamic_rotate %273 by %c5_i32 dim 1 : vector<4x128xf32>, i32 -> vector<4x128xf32>
    %cst_97 = arith.constant 0.000000e+00 : f32
    %275 = vector.shape_cast %164 : vector<1x128xi1> to vector<1x128xi1>
    %276 = vector.broadcast %275 : vector<1x128xi1> to vector<4x128xi1>
    %277 = vector.broadcast %cst_97 : f32 to vector<4x128xf32>
    %278 = arith.select %276, %274, %277 : vector<4x128xi1>, vector<4x128xf32>
    %c4_i32_98 = arith.constant 4 : i32
    %279 = tpu.dynamic_rotate %273 by %c4_i32_98 dim 1 : vector<4x128xf32>, i32 -> vector<4x128xf32>
    %cst_99 = arith.constant 0.000000e+00 : f32
    %280 = vector.shape_cast %175 : vector<1x128xi1> to vector<1x128xi1>
    %281 = vector.broadcast %280 : vector<1x128xi1> to vector<4x128xi1>
    %282 = vector.broadcast %cst_99 : f32 to vector<4x128xf32>
    %283 = arith.select %281, %279, %282 : vector<4x128xi1>, vector<4x128xf32>
    %c3_i32_100 = arith.constant 3 : i32
    %284 = tpu.dynamic_rotate %273 by %c3_i32_100 dim 1 : vector<4x128xf32>, i32 -> vector<4x128xf32>
    %cst_101 = arith.constant 0.000000e+00 : f32
    %285 = vector.shape_cast %186 : vector<1x128xi1> to vector<1x128xi1>
    %286 = vector.broadcast %285 : vector<1x128xi1> to vector<4x128xi1>
    %287 = vector.broadcast %cst_101 : f32 to vector<4x128xf32>
    %288 = arith.select %286, %284, %287 : vector<4x128xi1>, vector<4x128xf32>
    %c1_i32_102 = arith.constant 1 : i32
    %289 = tpu.dynamic_rotate %273 by %c1_i32_102 dim 1 : vector<4x128xf32>, i32 -> vector<4x128xf32>
    %cst_103 = arith.constant 0.000000e+00 : f32
    %290 = vector.shape_cast %206 : vector<1x128xi1> to vector<1x128xi1>
    %291 = vector.broadcast %290 : vector<1x128xi1> to vector<4x128xi1>
    %292 = vector.broadcast %cst_103 : f32 to vector<4x128xf32>
    %293 = arith.select %291, %289, %292 : vector<4x128xi1>, vector<4x128xf32>
    %cst_104 = arith.constant 0.000000e+00 : f32
    %294 = vector.shape_cast %217 : vector<1x128xi1> to vector<1x128xi1>
    %295 = vector.broadcast %294 : vector<1x128xi1> to vector<4x128xi1>
    %296 = vector.broadcast %cst_104 : f32 to vector<4x128xf32>
    %297 = arith.select %295, %273, %296 : vector<4x128xi1>, vector<4x128xf32>
    %c127_i32 = arith.constant 127 : i32
    %298 = tpu.dynamic_rotate %273 by %c127_i32 dim 1 : vector<4x128xf32>, i32 -> vector<4x128xf32>
    %cst_105 = arith.constant 0.000000e+00 : f32
    %299 = vector.shape_cast %228 : vector<1x128xi1> to vector<1x128xi1>
    %300 = vector.broadcast %299 : vector<1x128xi1> to vector<4x128xi1>
    %301 = vector.broadcast %cst_105 : f32 to vector<4x128xf32>
    %302 = arith.select %300, %298, %301 : vector<4x128xi1>, vector<4x128xf32>
    %c125_i32 = arith.constant 125 : i32
    %303 = tpu.dynamic_rotate %273 by %c125_i32 dim 1 : vector<4x128xf32>, i32 -> vector<4x128xf32>
    %cst_106 = arith.constant 0.000000e+00 : f32
    %304 = vector.shape_cast %248 : vector<1x128xi1> to vector<1x128xi1>
    %305 = vector.broadcast %304 : vector<1x128xi1> to vector<4x128xi1>
    %306 = vector.broadcast %cst_106 : f32 to vector<4x128xf32>
    %307 = arith.select %305, %303, %306 : vector<4x128xi1>, vector<4x128xf32>
    %c124_i32 = arith.constant 124 : i32
    %308 = tpu.dynamic_rotate %273 by %c124_i32 dim 1 : vector<4x128xf32>, i32 -> vector<4x128xf32>
    %cst_107 = arith.constant 0.000000e+00 : f32
    %309 = vector.shape_cast %259 : vector<1x128xi1> to vector<1x128xi1>
    %310 = vector.broadcast %309 : vector<1x128xi1> to vector<4x128xi1>
    %311 = vector.broadcast %cst_107 : f32 to vector<4x128xf32>
    %312 = arith.select %310, %308, %311 : vector<4x128xi1>, vector<4x128xf32>
    %c123_i32 = arith.constant 123 : i32
    %313 = tpu.dynamic_rotate %273 by %c123_i32 dim 1 : vector<4x128xf32>, i32 -> vector<4x128xf32>
    %cst_108 = arith.constant 0.000000e+00 : f32
    %314 = vector.shape_cast %270 : vector<1x128xi1> to vector<1x128xi1>
    %315 = vector.broadcast %314 : vector<1x128xi1> to vector<4x128xi1>
    %316 = vector.broadcast %cst_108 : f32 to vector<4x128xf32>
    %317 = arith.select %315, %313, %316 : vector<4x128xi1>, vector<4x128xf32>
    %318 = tpu.concatenate %278, %283, %288, %293, %297, %302, %307, %312, %317 in 0 : vector<4x128xf32>, vector<4x128xf32>, vector<4x128xf32>, vector<4x128xf32>, vector<4x128xf32>, vector<4x128xf32>, vector<4x128xf32>, vector<4x128xf32>, vector<4x128xf32> -> vector<36x128xf32>
    %319 = arith.truncf %318 : vector<36x128xf32> to vector<36x128xbf16>
    %c0_109 = arith.constant 0 : index
    %c0_110 = arith.constant 0 : index
    %320 = vector.load %arg3[%c0_109, %c0_110] : memref<4x36xbf16, #tpu.memory_space<vmem>>, vector<4x36xbf16>
    %cst_111 = arith.constant dense<0.000000e+00> : vector<4x128xf32>
    %321 = tpu.matmul %320, %319, %cst_111 {dimension_numbers = #tpu.dot_dimension_numbers<[1], [0], [0], [1], [0, 0, 1, 1], [], []>} : vector<4x36xbf16>, vector<36x128xbf16>, vector<4x128xf32> -> vector<4x128xf32>
    %c0_112 = arith.constant 0 : index
    %c0_113 = arith.constant 0 : index
    %322 = vector.load %arg4[%c0_112, %c0_113] : memref<4x1xf32, #tpu.memory_space<vmem>>, vector<4x1xf32>
    %323 = vector.broadcast %322 : vector<4x1xf32> to vector<4x128xf32>
    %324 = arith.addf %321, %323 : vector<4x128xf32>
    %325 = arith.truncf %324 : vector<4x128xf32> to vector<4x128xbf16>
    %c0_114 = arith.constant 0 : index
    %c0_115 = arith.constant 0 : index
    %326 = vector.load %arg2[%c0_114, %c0_115] : memref<128x512xbf16, #tpu.memory_space<vmem>>, vector<128x512xbf16>
    %cst_116 = arith.constant dense<0.000000e+00> : vector<4x512xf32>
    %327 = tpu.matmul %325, %326, %cst_116 {dimension_numbers = #tpu.dot_dimension_numbers<[1], [0], [0], [1], [0, 0, 1, 1], [], []>} : vector<4x128xbf16>, vector<128x512xbf16>, vector<4x512xf32> -> vector<4x512xf32>
    %328 = arith.addf %0, %327 : vector<4x512xf32>
    %329 = arith.negf %328 : vector<4x512xf32>
    %330 = math.exp %329 : vector<4x512xf32>
    %cst_117 = arith.constant 1.000000e+00 : f32
    %331 = vector.broadcast %cst_117 : f32 to vector<4x512xf32>
    %332 = arith.addf %331, %330 : vector<4x512xf32>
    %333 = arith.divf %331, %332 : vector<4x512xf32>
    %c17_i32 = arith.constant 17 : i32
    %334 = tpu.dynamic_rotate %0 by %c17_i32 dim 1 : vector<4x512xf32>, i32 -> vector<4x512xf32>
    %cst_118 = arith.constant 0.000000e+00 : f32
    %335 = vector.shape_cast %29 : vector<1x512xi1> to vector<1x512xi1>
    %336 = vector.broadcast %335 : vector<1x512xi1> to vector<4x512xi1>
    %337 = vector.broadcast %cst_118 : f32 to vector<4x512xf32>
    %338 = arith.select %336, %334, %337 : vector<4x512xi1>, vector<4x512xf32>
    %c16_i32_119 = arith.constant 16 : i32
    %339 = tpu.dynamic_rotate %0 by %c16_i32_119 dim 1 : vector<4x512xf32>, i32 -> vector<4x512xf32>
    %cst_120 = arith.constant 0.000000e+00 : f32
    %340 = vector.shape_cast %40 : vector<1x512xi1> to vector<1x512xi1>
    %341 = vector.broadcast %340 : vector<1x512xi1> to vector<4x512xi1>
    %342 = vector.broadcast %cst_120 : f32 to vector<4x512xf32>
    %343 = arith.select %341, %339, %342 : vector<4x512xi1>, vector<4x512xf32>
    %c15_i32_121 = arith.constant 15 : i32
    %344 = tpu.dynamic_rotate %0 by %c15_i32_121 dim 1 : vector<4x512xf32>, i32 -> vector<4x512xf32>
    %cst_122 = arith.constant 0.000000e+00 : f32
    %345 = vector.shape_cast %51 : vector<1x512xi1> to vector<1x512xi1>
    %346 = vector.broadcast %345 : vector<1x512xi1> to vector<4x512xi1>
    %347 = vector.broadcast %cst_122 : f32 to vector<4x512xf32>
    %348 = arith.select %346, %344, %347 : vector<4x512xi1>, vector<4x512xf32>
    %c1_i32_123 = arith.constant 1 : i32
    %349 = tpu.dynamic_rotate %0 by %c1_i32_123 dim 1 : vector<4x512xf32>, i32 -> vector<4x512xf32>
    %cst_124 = arith.constant 0.000000e+00 : f32
    %350 = vector.shape_cast %71 : vector<1x512xi1> to vector<1x512xi1>
    %351 = vector.broadcast %350 : vector<1x512xi1> to vector<4x512xi1>
    %352 = vector.broadcast %cst_124 : f32 to vector<4x512xf32>
    %353 = arith.select %351, %349, %352 : vector<4x512xi1>, vector<4x512xf32>
    %cst_125 = arith.constant 0.000000e+00 : f32
    %354 = vector.shape_cast %82 : vector<1x512xi1> to vector<1x512xi1>
    %355 = vector.broadcast %354 : vector<1x512xi1> to vector<4x512xi1>
    %356 = vector.broadcast %cst_125 : f32 to vector<4x512xf32>
    %357 = arith.select %355, %0, %356 : vector<4x512xi1>, vector<4x512xf32>
    %c511_i32 = arith.constant 511 : i32
    %358 = tpu.dynamic_rotate %0 by %c511_i32 dim 1 : vector<4x512xf32>, i32 -> vector<4x512xf32>
    %cst_126 = arith.constant 0.000000e+00 : f32
    %359 = vector.shape_cast %93 : vector<1x512xi1> to vector<1x512xi1>
    %360 = vector.broadcast %359 : vector<1x512xi1> to vector<4x512xi1>
    %361 = vector.broadcast %cst_126 : f32 to vector<4x512xf32>
    %362 = arith.select %360, %358, %361 : vector<4x512xi1>, vector<4x512xf32>
    %c497_i32 = arith.constant 497 : i32
    %363 = tpu.dynamic_rotate %0 by %c497_i32 dim 1 : vector<4x512xf32>, i32 -> vector<4x512xf32>
    %cst_127 = arith.constant 0.000000e+00 : f32
    %364 = vector.shape_cast %113 : vector<1x512xi1> to vector<1x512xi1>
    %365 = vector.broadcast %364 : vector<1x512xi1> to vector<4x512xi1>
    %366 = vector.broadcast %cst_127 : f32 to vector<4x512xf32>
    %367 = arith.select %365, %363, %366 : vector<4x512xi1>, vector<4x512xf32>
    %c496_i32 = arith.constant 496 : i32
    %368 = tpu.dynamic_rotate %0 by %c496_i32 dim 1 : vector<4x512xf32>, i32 -> vector<4x512xf32>
    %cst_128 = arith.constant 0.000000e+00 : f32
    %369 = vector.shape_cast %124 : vector<1x512xi1> to vector<1x512xi1>
    %370 = vector.broadcast %369 : vector<1x512xi1> to vector<4x512xi1>
    %371 = vector.broadcast %cst_128 : f32 to vector<4x512xf32>
    %372 = arith.select %370, %368, %371 : vector<4x512xi1>, vector<4x512xf32>
    %c495_i32 = arith.constant 495 : i32
    %373 = tpu.dynamic_rotate %0 by %c495_i32 dim 1 : vector<4x512xf32>, i32 -> vector<4x512xf32>
    %cst_129 = arith.constant 0.000000e+00 : f32
    %374 = vector.shape_cast %135 : vector<1x512xi1> to vector<1x512xi1>
    %375 = vector.broadcast %374 : vector<1x512xi1> to vector<4x512xi1>
    %376 = vector.broadcast %cst_129 : f32 to vector<4x512xf32>
    %377 = arith.select %375, %373, %376 : vector<4x512xi1>, vector<4x512xf32>
    %378 = tpu.concatenate %338, %343, %348, %353, %357, %362, %367, %372, %377 in 0 : vector<4x512xf32>, vector<4x512xf32>, vector<4x512xf32>, vector<4x512xf32>, vector<4x512xf32>, vector<4x512xf32>, vector<4x512xf32>, vector<4x512xf32>, vector<4x512xf32> -> vector<36x512xf32>
    %379 = arith.truncf %378 : vector<36x512xf32> to vector<36x512xbf16>
    %c0_130 = arith.constant 0 : index
    %c0_131 = arith.constant 0 : index
    %380 = vector.load %arg5[%c0_130, %c0_131] : memref<4x36xbf16, #tpu.memory_space<vmem>>, vector<4x36xbf16>
    %cst_132 = arith.constant dense<0.000000e+00> : vector<4x512xf32>
    %381 = tpu.matmul %380, %379, %cst_132 {dimension_numbers = #tpu.dot_dimension_numbers<[1], [0], [0], [1], [0, 0, 1, 1], [], []>} : vector<4x36xbf16>, vector<36x512xbf16>, vector<4x512xf32> -> vector<4x512xf32>
    %c0_133 = arith.constant 0 : index
    %c0_134 = arith.constant 0 : index
    %382 = vector.load %arg6[%c0_133, %c0_134] : memref<4x1xf32, #tpu.memory_space<vmem>>, vector<4x1xf32>
    %383 = vector.broadcast %382 : vector<4x1xf32> to vector<4x512xf32>
    %384 = arith.addf %381, %383 : vector<4x512xf32>
    %385 = arith.mulf %384, %333 : vector<4x512xf32>
    %c17_i32_135 = arith.constant 17 : i32
    %386 = tpu.dynamic_rotate %385 by %c17_i32_135 dim 1 : vector<4x512xf32>, i32 -> vector<4x512xf32>
    %cst_136 = arith.constant 0.000000e+00 : f32
    %387 = vector.shape_cast %29 : vector<1x512xi1> to vector<1x512xi1>
    %388 = vector.broadcast %387 : vector<1x512xi1> to vector<4x512xi1>
    %389 = vector.broadcast %cst_136 : f32 to vector<4x512xf32>
    %390 = arith.select %388, %386, %389 : vector<4x512xi1>, vector<4x512xf32>
    %c16_i32_137 = arith.constant 16 : i32
    %391 = tpu.dynamic_rotate %385 by %c16_i32_137 dim 1 : vector<4x512xf32>, i32 -> vector<4x512xf32>
    %cst_138 = arith.constant 0.000000e+00 : f32
    %392 = vector.shape_cast %40 : vector<1x512xi1> to vector<1x512xi1>
    %393 = vector.broadcast %392 : vector<1x512xi1> to vector<4x512xi1>
    %394 = vector.broadcast %cst_138 : f32 to vector<4x512xf32>
    %395 = arith.select %393, %391, %394 : vector<4x512xi1>, vector<4x512xf32>
    %c15_i32_139 = arith.constant 15 : i32
    %396 = tpu.dynamic_rotate %385 by %c15_i32_139 dim 1 : vector<4x512xf32>, i32 -> vector<4x512xf32>
    %cst_140 = arith.constant 0.000000e+00 : f32
    %397 = vector.shape_cast %51 : vector<1x512xi1> to vector<1x512xi1>
    %398 = vector.broadcast %397 : vector<1x512xi1> to vector<4x512xi1>
    %399 = vector.broadcast %cst_140 : f32 to vector<4x512xf32>
    %400 = arith.select %398, %396, %399 : vector<4x512xi1>, vector<4x512xf32>
    %c1_i32_141 = arith.constant 1 : i32
    %401 = tpu.dynamic_rotate %385 by %c1_i32_141 dim 1 : vector<4x512xf32>, i32 -> vector<4x512xf32>
    %cst_142 = arith.constant 0.000000e+00 : f32
    %402 = vector.shape_cast %71 : vector<1x512xi1> to vector<1x512xi1>
    %403 = vector.broadcast %402 : vector<1x512xi1> to vector<4x512xi1>
    %404 = vector.broadcast %cst_142 : f32 to vector<4x512xf32>
    %405 = arith.select %403, %401, %404 : vector<4x512xi1>, vector<4x512xf32>
    %cst_143 = arith.constant 0.000000e+00 : f32
    %406 = vector.shape_cast %82 : vector<1x512xi1> to vector<1x512xi1>
    %407 = vector.broadcast %406 : vector<1x512xi1> to vector<4x512xi1>
    %408 = vector.broadcast %cst_143 : f32 to vector<4x512xf32>
    %409 = arith.select %407, %385, %408 : vector<4x512xi1>, vector<4x512xf32>
    %c511_i32_144 = arith.constant 511 : i32
    %410 = tpu.dynamic_rotate %385 by %c511_i32_144 dim 1 : vector<4x512xf32>, i32 -> vector<4x512xf32>
    %cst_145 = arith.constant 0.000000e+00 : f32
    %411 = vector.shape_cast %93 : vector<1x512xi1> to vector<1x512xi1>
    %412 = vector.broadcast %411 : vector<1x512xi1> to vector<4x512xi1>
    %413 = vector.broadcast %cst_145 : f32 to vector<4x512xf32>
    %414 = arith.select %412, %410, %413 : vector<4x512xi1>, vector<4x512xf32>
    %c497_i32_146 = arith.constant 497 : i32
    %415 = tpu.dynamic_rotate %385 by %c497_i32_146 dim 1 : vector<4x512xf32>, i32 -> vector<4x512xf32>
    %cst_147 = arith.constant 0.000000e+00 : f32
    %416 = vector.shape_cast %113 : vector<1x512xi1> to vector<1x512xi1>
    %417 = vector.broadcast %416 : vector<1x512xi1> to vector<4x512xi1>
    %418 = vector.broadcast %cst_147 : f32 to vector<4x512xf32>
    %419 = arith.select %417, %415, %418 : vector<4x512xi1>, vector<4x512xf32>
    %c496_i32_148 = arith.constant 496 : i32
    %420 = tpu.dynamic_rotate %385 by %c496_i32_148 dim 1 : vector<4x512xf32>, i32 -> vector<4x512xf32>
    %cst_149 = arith.constant 0.000000e+00 : f32
    %421 = vector.shape_cast %124 : vector<1x512xi1> to vector<1x512xi1>
    %422 = vector.broadcast %421 : vector<1x512xi1> to vector<4x512xi1>
    %423 = vector.broadcast %cst_149 : f32 to vector<4x512xf32>
    %424 = arith.select %422, %420, %423 : vector<4x512xi1>, vector<4x512xf32>
    %c495_i32_150 = arith.constant 495 : i32
    %425 = tpu.dynamic_rotate %385 by %c495_i32_150 dim 1 : vector<4x512xf32>, i32 -> vector<4x512xf32>
    %cst_151 = arith.constant 0.000000e+00 : f32
    %426 = vector.shape_cast %135 : vector<1x512xi1> to vector<1x512xi1>
    %427 = vector.broadcast %426 : vector<1x512xi1> to vector<4x512xi1>
    %428 = vector.broadcast %cst_151 : f32 to vector<4x512xf32>
    %429 = arith.select %427, %425, %428 : vector<4x512xi1>, vector<4x512xf32>
    %430 = tpu.concatenate %390, %395, %400, %405, %409, %414, %419, %424, %429 in 0 : vector<4x512xf32>, vector<4x512xf32>, vector<4x512xf32>, vector<4x512xf32>, vector<4x512xf32>, vector<4x512xf32>, vector<4x512xf32>, vector<4x512xf32>, vector<4x512xf32> -> vector<36x512xf32>
    %431 = arith.truncf %430 : vector<36x512xf32> to vector<36x512xbf16>
    %c0_152 = arith.constant 0 : index
    %c0_153 = arith.constant 0 : index
    %432 = vector.load %arg7[%c0_152, %c0_153] : memref<8x36xbf16, #tpu.memory_space<vmem>>, vector<8x36xbf16>
    %cst_154 = arith.constant dense<0.000000e+00> : vector<8x512xf32>
    %433 = tpu.matmul %432, %431, %cst_154 {dimension_numbers = #tpu.dot_dimension_numbers<[1], [0], [0], [1], [0, 0, 1, 1], [], []>} : vector<8x36xbf16>, vector<36x512xbf16>, vector<8x512xf32> -> vector<8x512xf32>
    %c0_155 = arith.constant 0 : index
    %c0_156 = arith.constant 0 : index
    %434 = vector.load %arg8[%c0_155, %c0_156] : memref<8x1xf32, #tpu.memory_space<vmem>>, vector<8x1xf32>
    %435 = vector.broadcast %434 : vector<8x1xf32> to vector<8x512xf32>
    %436 = arith.addf %433, %435 : vector<8x512xf32>
    %c0_157 = arith.constant 0 : index
    %c0_158 = arith.constant 0 : index
    %437 = vector.load %arg9[%c0_157, %c0_158] : memref<8x512xf32, #tpu.memory_space<vmem>>, vector<8x512xf32>
    tpu.vector_store %arg9[%c0_157, %c0_158], %436 {strides = array<i32>} : memref<8x512xf32, #tpu.memory_space<vmem>>, vector<8x512xf32>,
    return
  }
}

</mosaic_0001>

<bundles_post_ra>
// kernel: tpu_custom_call.1
= control target key start
LH: loop header
LB: loop body
LE: loop exit
PB: predicated region body
PF: predicated region fallthrough
CT: control target
= control target key end

     0   :  { %14 = vsyncpa [#allocation3], 0  ;;  %s3594_s0 = inlined_call_operand.hbm [shape: f32[4,512], index: 0, kind: input, shape index: {}]   ;;  %s3595_s1 = inlined_call_operand.hbm [shape: bf16[512,128], index: 1, kind: input, shape index: {}]   ;;  %s3596_s2 = inlined_call_operand.hbm [shape: bf16[128,512], index: 2, kind: input, shape index: {}]   ;;  %s3597_s3 = inlined_call_operand.vmem [shape: bf16[4,36], index: 3, kind: input, shape index: {}]   ;;  %s3598_s4 = inlined_call_operand.vmem [shape: f32[4,1], index: 4, kind: input, shape index: {}]   ;;  %s3599_s5 = inlined_call_operand.vmem [shape: bf16[4,36], index: 5, kind: input, shape index: {}]   ;;  %s3600_s6 = inlined_call_operand.vmem [shape: f32[4,1], index: 6, kind: input, shape index: {}]   ;;  %s3601_s7 = inlined_call_operand.vmem [shape: bf16[8,36], index: 7, kind: input, shape index: {}]   ;;  %s3602_s8 = inlined_call_operand.vmem [shape: f32[8,1], index: 8, kind: input, shape index: {}]   ;;  %s3603_s9 = inlined_call_operand.hbm [shape: f32[8,512], index: 9, kind: output, shape index: {}]  }
   0x1   :  { %15 = vsyncpa [#allocation6], 0  ;;  %s32_s11 = sshll.u32 %s3595_s1, 4  ;;  %s33_s11 = int_to_ptr.hbm [resolvable:$true] %s32_s11 }
   0x2   :  { %16 = vsyncpa [#allocation4], 0  ;;  %s2403_s12 = smov [#allocation5]   ;;  %s22_s16 = sshll.u32 %s3594_s0, 4  ;;  %s23_s16 = int_to_ptr.hbm [resolvable:$true] %s22_s16 }
   0x3   :  { %s34_s13 = sshll.u32 %s2403_s12, 4  ;;  %s2404_s17 = smov 64   ;;  %s35_s13 = int_to_ptr.vmem [resolvable:$true] %s34_s13 }
   0x4   :  { %s2405_s18 = smov 4   ;;  %s2406_s19 = smov [#allocation2]  }
   0x5   :  { %40 = dma.hbm_to_vmem [thread:$0]  %s33_s11, 4096, %s35_s13, [#allocation6], %s2404_s17, %s2404_s17, %s2405_s18  }
   0x6   :  { %s24_s20 = sshll.u32 %s2406_s19, 4  ;;  %s45_s1 = sshll.u32 %s3596_s2, 4  ;;  %s25_s20 = int_to_ptr.vmem [resolvable:$true] %s24_s20  ;;  %s46_s1 = int_to_ptr.hbm [resolvable:$true] %s45_s1 }
   0x7   :  { %27 = dma.hbm_to_vmem [thread:$0]  %s23_s16, 256, %s25_s20, [#allocation3]  }
   0x8   :  { %s2407_s23 = smov [#allocation7]   ;;  %s2408_s25 = smov 256  }
   0x9   :  { %s47_s24 = sshll.u32 %s2407_s23, 4  ;;  %s2409_s26 = smov 16   ;;  %s48_s24 = int_to_ptr.vmem [resolvable:$true] %s47_s24 }
   0xa   :  { %53 = dma.hbm_to_vmem [thread:$0]  %s46_s1, 4096, %s48_s24, [#allocation6], %s2408_s25, %s2408_s25, %s2409_s26  }
   0xb   :  { %2397 = dma.done.wait [#allocation3], 256  }
   0xc   :  { %2398 = vsyncadd [#allocation3], 4294967040 }
   0xd   :  { %2399 = dma.done.wait [#allocation6], 8192  }
   0xe   :  { %2400 = vsyncadd [#allocation6], 4294959104  ;;  %v2073_v0 = vld [vmem:[#allocation5 + $0x38] sm:$0xff]  ;;  %v2072_v4 = vld [vmem:[#allocation5 + $0x30] sm:$0xff]  ;;  %s2410_s0 = smov 124   ;;  %s2411_s2 = smov 123  }
   0xf   :  { %v2081_v1 = vld [vmem:[#allocation5 + $0x78] sm:$0xff]  ;;  %579 = vmatpush.bf16.msra.mxu0 %v2073_v0  ;;  %v2080_v5 = vld [vmem:[#allocation5 + $0x70] sm:$0xff]  ;;  %v2071_v8 = vld [vmem:[#allocation5 + $0x28] sm:$0xff]  ;;  %s2412_s27 = smov 1   ;;  %s2413_s28 = smov 125   ;;  %vm3606_vm15 = vcmask 1041408  }
  0x10   :  { %v2089_v2 = vld [vmem:[#allocation5 + $0xb8] sm:$0xff]  ;;  %592 = vmatpush.bf16.msra.mxu1 %v2081_v1  ;;  %v2088_v6 = vld [vmem:[#allocation5 + $0xb0] sm:$0xff]  ;;  %v2079_v9 = vld [vmem:[#allocation5 + $0x68] sm:$0xff]  ;;  %s2414_s29 = smov 127   ;;  %s2415_s30 = smov 3  }
  0x11   :  { %v2097_v3 = vld [vmem:[#allocation5 + $0xf8] sm:$0xff]  ;;  %605 = vmatpush.bf16.msra.mxu2 %v2089_v2  ;;  %v2096_v7 = vld [vmem:[#allocation5 + $0xf0] sm:$0xff]  ;;  %v2087_v10 = vld [vmem:[#allocation5 + $0xa8] sm:$0xff]  ;;  %s2416_s10 = smov 5   ;;  %s2417_s11 = smov 111  }
  0x12   :  { %618 = vmatpush.bf16.msra.mxu3 %v2097_v3  ;;  %v2095_v11 = vld [vmem:[#allocation5 + $0xe8] sm:$0xff]  ;;  %v2070_v12 = vld [vmem:[#allocation5 + $0x20] sm:$0xff]  ;;  %v2485_v14 = vld [vmem:[#allocation2] sm:$0xff]  ;;  %s2418_s12 = smov 112   ;;  %s2421_s15 = smov 17  }
  0x13   :  { %580 = vmatpush.bf16.msra.mxu0 %v2072_v4  ;;  %v2078_v13 = vld [vmem:[#allocation5 + $0x60] sm:$0xff]  ;;  %308 = vst [vmem:[#allocation1] ss:$2 sm:$0xff] %v2485_v14  ;;  %v2488_v17 = vld [vmem:[#allocation2 + $0x8] sm:$0xff]  ;;  %v2068_v22 = vld [vmem:[#allocation5 + $0x10] sm:$0xff]  ;;  %s1788_s25 = sshll.u32 %s3603_s9, 4  ;;  %s1789_s25 = int_to_ptr.hbm [resolvable:$true] %s1788_s25 }
  0x14   :  { %593 = vmatpush.bf16.msra.mxu1 %v2080_v5  ;;  %v2086_v15 = vld [vmem:[#allocation5 + $0xa0] sm:$0xff]  ;;  %310 = vst [vmem:[#allocation1 + $0x10] ss:$2 sm:$0xff] %v2488_v17  ;;  %v2069_v18 = vld [vmem:[#allocation5 + $0x18] sm:$0xff]  ;;  %v2076_v23 = vld [vmem:[#allocation5 + $0x50] sm:$0xff] }
  0x15   :  { %606 = vmatpush.bf16.msra.mxu2 %v2088_v6  ;;  %v2094_v16 = vld [vmem:[#allocation5 + $0xe0] sm:$0xff]  ;;  %v2077_v19 = vld [vmem:[#allocation5 + $0x58] sm:$0xff]  ;;  %v2084_v26 = vld [vmem:[#allocation5 + $0x90] sm:$0xff] }
  0x16   :  { %619 = vmatpush.bf16.msra.mxu3 %v2096_v7  ;;  %v2085_v20 = vld [vmem:[#allocation5 + $0x98] sm:$0xff]  ;;  %v2092_v27 = vld [vmem:[#allocation5 + $0xd0] sm:$0xff]  ;;  %v2067_v30 = vld [vmem:[#allocation5 + $0x8] sm:$0xff] }
  0x17   :  { %581 = vmatpush.bf16.msra.mxu0 %v2071_v8  ;;  %v2093_v21 = vld [vmem:[#allocation5 + $0xd8] sm:$0xff]  ;;  %v2075_v31 = vld [vmem:[#allocation5 + $0x48] sm:$0xff]  ;;  %v2066_v34 = vld [vmem:[#allocation5] sm:$0xff] }
  0x18   :  { %594 = vmatpush.bf16.msra.mxu1 %v2079_v9  ;;  %v2083_v32 = vld [vmem:[#allocation5 + $0x88] sm:$0xff]  ;;  %v2074_v35 = vld [vmem:[#allocation5 + $0x40] sm:$0xff] }
  0x19   :  { %607 = vmatpush.bf16.msra.mxu2 %v2087_v10  ;;  %v2091_v33 = vld [vmem:[#allocation5 + $0xc8] sm:$0xff]  ;;  %v2082_v38 = vld [vmem:[#allocation5 + $0x80] sm:$0xff] }
  0x1a   :  { %620 = vmatpush.bf16.msra.mxu3 %v2095_v11  ;;  %v311_v24 = vld.sshfl [vmem:[#allocation1] sm:$0xff pattern:$0x75316420]  ;;  %v312_v25 = vld.sshfl [vmem:[#allocation1 + $0x8] sm:$0xff pattern:$0x75316420] }
  0x1b   :  { %582 = vmatpush.bf16.msra.mxu0 %v2070_v12  ;;  %1017 = vst [vmem:[#allocation1] ss:$2 sm:$0xff] %v2485_v14  ;;  %v313_v28 = vld.sshfl [vmem:[#allocation1 + $0x10] sm:$0xff pattern:$0x75316420]  ;;  %v2090_v39 = vld [vmem:[#allocation5 + $0xc0] sm:$0xff]  ;;  %v319_v40 = vpack.c.bf16 %v311_v24, %v311_v24  ;;  %v320_v41 = vpack.c.bf16 %v312_v25, %v312_v25 }
  0x1c   :  { %595 = vmatpush.bf16.msra.mxu1 %v2078_v13  ;;  %v314_v29 = vld.sshfl [vmem:[#allocation1 + $0x18] sm:$0xff pattern:$0x75316420]  ;;  %v321_v42 = vpack.c.bf16 %v313_v28, %v313_v28 }
  0x1d   :  { %608 = vmatpush.bf16.msra.mxu2 %v2086_v15  ;;  %1019 = vst [vmem:[#allocation1 + $0x10] ss:$2 sm:$0xff] %v2488_v17  ;;  %v322_v43 = vpack.c.bf16 %v314_v29, %v314_v29 }
  0x1e   :  { %621 = vmatpush.bf16.msra.mxu3 %v2094_v16 }
  0x1f   :  { %583 = vmatpush.bf16.msra.mxu0 %v2069_v18 }
  0x20   :  { %596 = vmatpush.bf16.msra.mxu1 %v2077_v19  ;;  %v81_v19 = vlaneseq }
  0x21   :  { %609 = vmatpush.bf16.msra.mxu2 %v2085_v20 }
  0x22   :  { %622 = vmatpush.bf16.msra.mxu3 %v2093_v21  ;;  %v2493_v36 = vld.sshfl [vmem:[#allocation1] sm:$0xff pattern:$0x75316420]  ;;  %v2495_v37 = vld.sshfl [vmem:[#allocation1 + $0x8] sm:$0xff pattern:$0x75316420] }
  0x23   :  { %584 = vmatpush.bf16.msra.mxu0 %v2068_v22  ;;  %1053 = vst [vmem:[#allocation1] ss:$2 sm:$0xff] %v2485_v14  ;;  %v2580_v24 = vand.u32 127, %v81_v19 }
  0x24   :  { %597 = vmatpush.bf16.msra.mxu1 %v2076_v23  ;;  %v2508_v48 = vld.sshfl [vmem:[#allocation1 + $0x10] sm:$0xff pattern:$0x75316420]  ;;  %v2510_v49 = vld.sshfl [vmem:[#allocation1 + $0x18] sm:$0xff pattern:$0x75316420] }
  0x25   :  { %610 = vmatpush.bf16.msra.mxu2 %v2084_v26  ;;  %1055 = vst [vmem:[#allocation1 + $0x10] ss:$2 sm:$0xff] %v2488_v17  ;;  %v262_v25 = vshra.s32 %v2580_v24, 2  ;;  %vm265_vm7 = vcmp.lt.s32.totalorder %v2580_v24, 32 }
  0x26   :  { %623 = vmatpush.bf16.msra.mxu3 %v2092_v27 }
  0x27   :  { %585 = vmatpush.bf16.msra.mxu0 %v2067_v30 }
  0x28   :  { %598 = vmatpush.bf16.msra.mxu1 %v2075_v31 }
  0x29   :  { %611 = vmatpush.bf16.msra.mxu2 %v2083_v32  ;;  %v263_v32 = vand.u32 3, %v262_v25 }
  0x2a   :  { %624 = vmatpush.bf16.msra.mxu3 %v2091_v33  ;;  %v2498_v44 = vld.sshfl [vmem:[#allocation1] sm:$0xff pattern:$0x75316420]  ;;  %v2500_v45 = vld.sshfl [vmem:[#allocation1 + $0x8] sm:$0xff pattern:$0x75316420] }
  0x2b   :  { %586 = vmatpush.bf16.msra.mxu0 %v2066_v34  ;;  %1089 = vst [vmem:[#allocation1] ss:$2 sm:$0xff] %v2485_v14  ;;  %v296_v33 = vadd.s32 1, %v263_v32  ;;  %v264_v34 = vand.u32 3, %v2580_v24  ;;  %vm287_vm5 = vcmp.ge.s32.totalorder %v263_v32, 0  ;;  %vm288_vm6 = vcmp.lt.s32.totalorder %v263_v32, 4 }
  0x2c   :  { %599 = vmatpush.bf16.msra.mxu1 %v2074_v35  ;;  %v2518_v52 = vld.sshfl [vmem:[#allocation1 + $0x10] sm:$0xff pattern:$0x75316420]  ;;  %v2520_v53 = vld.sshfl [vmem:[#allocation1 + $0x18] sm:$0xff pattern:$0x75316420]  ;;  %vm2612_vm12 = vmand %vm287_vm5, %vm288_vm6 }
  0x2d   :  { %612 = vmatpush.bf16.msra.mxu2 %v2082_v38  ;;  %1091 = vst [vmem:[#allocation1 + $0x10] ss:$2 sm:$0xff] %v2488_v17  ;;  %v2586_v35 = vadd.s32 1, %v264_v34  ;;  %vm297_vm0 = vcmp.ge.s32.totalorder %v296_v33, 0  ;;  %vm298_vm1 = vcmp.lt.s32.totalorder %v296_v33, 4  ;;  %vm2666_vm6 = vmand %vm2612_vm12, %vm265_vm7 }
  0x2e   :  { %625 = vmatpush.bf16.msra.mxu3 %v2090_v39  ;;  %587 = vmatmul.bf16.vlgmr.msra.gmra.mxu0 %v319_v40  ;;  %vm2589_vm2 = vmand %vm297_vm0, %vm298_vm1 }
  0x2f   :  { %600 = vmatmul.bf16.vlgmr.msra.gmra.mxu1 %v320_v41  ;;  %vm283_vm3 = vcmp.lt.s32.totalorder %v2586_v35, 4  ;;  %v695_v41 = vld [vmem:[%s3598_s4] sm:$0xf]  ;;  %s2420_s4 = smov 113  }
  0x30   :  { %613 = vmatmul.bf16.vlgmr.msra.gmra.mxu2 %v321_v42  ;;  %v266_v42 = vadd.s32 4294967295, %v263_v32  ;;  %vm304_vm4 = vmand %vm2589_vm2, %vm283_vm3 }
  0x31   :  { %626 = vmatmul.bf16.vlgmr.msra.gmra.mxu3 %v322_v43  ;;  %v2419_v43 = vmov 0   ;;  %vm305_vm11 = vmand %vm304_vm4, %vm265_vm7 }
  0x32   :  { %v2503_v46 = vld.sshfl [vmem:[#allocation1] sm:$0xff pattern:$0x75316420]  ;;  %v2505_v47 = vld.sshfl [vmem:[#allocation1 + $0x8] sm:$0xff pattern:$0x75316420]  ;;  %2151 = vset.pattern.permute.xlu2 %v2419_v43  ;;  %2222 = vset.pattern.permute.xlu0 %v2419_v43  ;;  %vm294_vm1 = vmand %vm2612_vm12, %vm283_vm3 }
  0x33   :  { %1125 = vst [vmem:[#allocation1] ss:$2 sm:$0xff] %v2485_v14  ;;  %vm267_vm8 = vcmp.ge.s32.totalorder %v266_v42, 0  ;;  %vm268_vm9 = vcmp.lt.s32.totalorder %v266_v42, 4  ;;  %vm2641_vm4 = vmand %vm2589_vm2, %vm265_vm7  ;;  %v2126_v43 = vld [vmem:[#allocation7 + $0xe4] sm:$0xf] }
  0x34   :  { %v2528_v56 = vld.sshfl [vmem:[#allocation1 + $0x10] sm:$0xff pattern:$0x75316420]  ;;  %v2530_v57 = vld.sshfl [vmem:[#allocation1 + $0x18] sm:$0xff pattern:$0x75316420]  ;;  %vm2616_vm13 = vmand %vm267_vm8, %vm268_vm9 }
  0x35   :  { %1127 = vst [vmem:[#allocation1 + $0x10] ss:$2 sm:$0xff] %v2488_v17  ;;  %vm2674_vm8 = vmand %vm2616_vm13, %vm265_vm7 }
  0x3a   :  { %v2513_v50 = vld.sshfl [vmem:[#allocation1] sm:$0xff pattern:$0x75316420]  ;;  %v2515_v51 = vld.sshfl [vmem:[#allocation1 + $0x8] sm:$0xff pattern:$0x75316420] }
  0x3b   :  { %1169 = vst [vmem:[#allocation1] ss:$2 sm:$0xff] %v2485_v14 }
  0x3c   :  { %v2538_v60 = vld.sshfl [vmem:[#allocation1 + $0x10] sm:$0xff pattern:$0x75316420]  ;;  %v2540_v61 = vld.sshfl [vmem:[#allocation1 + $0x18] sm:$0xff pattern:$0x75316420] }
  0x3d   :  { %1171 = vst [vmem:[#allocation1 + $0x10] ss:$2 sm:$0xff] %v2488_v17  ;;  %v2207_v42 = vpack.i.bf16 %v2540_v61, %v2538_v60  ;;  %v2042_v60 = vld [vmem:[#allocation7 + $0xe0] sm:$0xf]  ;;  %v2128_v61 = vld [vmem:[#allocation7 + $0xec] sm:$0xf0] }
  0x42   :  { %v2523_v54 = vld.sshfl [vmem:[#allocation1] sm:$0xff pattern:$0x75316420]  ;;  %v2525_v55 = vld.sshfl [vmem:[#allocation1 + $0x8] sm:$0xff pattern:$0x75316420] }
  0x43   :  { %1184 = vst [vmem:[#allocation1] ss:$2 sm:$0xff] %v2485_v14 }
  0x44   :  { %v2548_v0 = vld.sshfl [vmem:[#allocation1 + $0x10] sm:$0xff pattern:$0x75316420]  ;;  %v2550_v1 = vld.sshfl [vmem:[#allocation1 + $0x18] sm:$0xff pattern:$0x75316420] }
  0x45   :  { %1186 = vst [vmem:[#allocation1 + $0x10] ss:$2 sm:$0xff] %v2488_v17 }
  0x4a   :  { %v2533_v58 = vld.sshfl [vmem:[#allocation1] sm:$0xff pattern:$0x75316420]  ;;  %v2535_v59 = vld.sshfl [vmem:[#allocation1 + $0x8] sm:$0xff pattern:$0x75316420] }
  0x4b   :  { %1220 = vst [vmem:[#allocation1] ss:$2 sm:$0xff] %v2485_v14 }
  0x4c   :  { %v2553_v2 = vld.sshfl [vmem:[#allocation1 + $0x10] sm:$0xff pattern:$0x75316420]  ;;  %v1190_v3 = vld.sshfl [vmem:[#allocation1 + $0x18] sm:$0xff pattern:$0x75316420] }
  0x4d   :  { %1222 = vst [vmem:[#allocation1 + $0x10] ss:$2 sm:$0xff] %v2488_v17  ;;  %v2167_v39 = vpack.i.bf16 %v2533_v58, %v1190_v3  ;;  %v270_v58 = vadd.s32 4294967295, %v264_v34 }
  0x4f   :  { %vm271_vm10 = vcmp.ge.s32.totalorder %v270_v58, 0  ;;  %v2043_v58 = vor.u32 %v2128_v61, %v2042_v60  ;;  %v1980_v60 = vld [vmem:[#allocation7 + $0x70] sm:$0xf0]  ;;  %v1986_v61 = vld [vmem:[#allocation7 + $0x68] sm:$0xf] }
  0x50   :  { %vm2625_vm14 = vmand %vm2612_vm12, %vm271_vm10 }
  0x51   :  { %vm300_vm0 = vmand %vm2589_vm2, %vm271_vm10  ;;  %915 = vmatpush.bf16.msrb.mxu1 %v2043_v58 }
  0x52   :  { %v2543_v62 = vld.sshfl [vmem:[#allocation1] sm:$0xff pattern:$0x75316420]  ;;  %v2545_v63 = vld.sshfl [vmem:[#allocation1 + $0x8] sm:$0xff pattern:$0x75316420]  ;;  %vm2652_vm5 = vmand %vm300_vm0, %vm265_vm7 }
  0x53   :  { %1256 = vst [vmem:[#allocation1] ss:$2 sm:$0xff] %v2485_v14  ;;  %vm295_vm2 = vmand %vm294_vm1, %vm265_vm7 }
  0x54   :  { %v2556_v4 = vld.sshfl [vmem:[#allocation1 + $0x10] sm:$0xff pattern:$0x75316420]  ;;  %v2558_v5 = vld.sshfl [vmem:[#allocation1 + $0x18] sm:$0xff pattern:$0x75316420]  ;;  %vm2684_vm9 = vmand %vm2625_vm14, %vm265_vm7 }
  0x55   :  { %1258 = vst [vmem:[#allocation1 + $0x10] ss:$2 sm:$0xff] %v2488_v17  ;;  %v2187_v3 = vpack.i.bf16 %v2543_v62, %v2558_v5  ;;  %vm285_vm12 = vmand %vm2616_vm13, %vm283_vm3 }
  0x56   :  { %vm274_vm14 = vmand %vm2616_vm13, %vm271_vm10 }
  0x57   :  { %vm286_vm3 = vmand %vm285_vm12, %vm265_vm7 }
  0x58   :  { %vm275_vm10 = vmand %vm274_vm14, %vm265_vm7  ;;  %vm3604_vm7 = vcmask 293888  }
  0x5a   :  { %v2574_v20 = vld.sshfl [vmem:[#allocation1] sm:$0xff pattern:$0x75316420]  ;;  %v1260_v21 = vld.sshfl [vmem:[#allocation1 + $0x8] sm:$0xff pattern:$0x75316420] }
  0x5b   :  { %1292 = vst [vmem:[#allocation1] ss:$2 sm:$0xff] %v2485_v14 }
  0x5c   :  { %v1261_v22 = vld.sshfl [vmem:[#allocation1 + $0x10] sm:$0xff pattern:$0x75316420]  ;;  %v2576_v23 = vld.sshfl [vmem:[#allocation1 + $0x18] sm:$0xff pattern:$0x75316420] }
  0x5d   :  { %1294 = vst [vmem:[#allocation1 + $0x10] ss:$2 sm:$0xff] %v2488_v17  ;;  %v2172_v38 = vpack.i.bf16 %v1261_v22, %v1260_v21 }
  0x62   :  { %v1295_v26 = vld.sshfl [vmem:[#allocation1] sm:$0xff pattern:$0x75316420]  ;;  %v1296_v27 = vld.sshfl [vmem:[#allocation1 + $0x8] sm:$0xff pattern:$0x75316420] }
  0x64   :  { %v1298_v28 = vld.sshfl [vmem:[#allocation1 + $0x18] sm:$0xff pattern:$0x75316420]  ;;  %v1297_v29 = vld.sshfl [vmem:[#allocation1 + $0x10] sm:$0xff pattern:$0x75316420] }
  0x65   :  { %v2157_v30 = vpack.i.bf16 %v1295_v26, %v1298_v28  ;;  %v2152_v31 = vpack.i.bf16 %v1297_v29, %v1296_v27 }
  0xab   :  { %v588_v6 = vpop.f32.mrf.mxu0 }
  0xac   :  { %v601_v7 = vpop.f32.mrf.mxu1 }
  0xad   :  { %v602_v8 = vadd.f32 %v601_v7, %v588_v6  ;;  %v2182_v6 = vpack.i.bf16 %v2556_v4, %v2545_v63  ;;  %v2162_v7 = vpack.i.bf16 %v2553_v2, %v2535_v59 }
  0xb3   :  { %v614_v9 = vpop.f32.mrf.mxu2  ;;  %v590_v12 = vpop.f32.mrf.mxu0 }
  0xb4   :  { %v627_v10 = vpop.f32.mrf.mxu3  ;;  %v615_v11 = vadd.f32 %v614_v9, %v602_v8  ;;  %v603_v13 = vpop.f32.mrf.mxu1  ;;  %v2202_v12 = vpack.i.bf16 %v2515_v51, %v2513_v50  ;;  %v2052_v9 = vld [vmem:[#allocation7 + $0xf8] sm:$0xf0]  ;;  %v2012_v51 = vld [vmem:[#allocation7 + $0xb0] sm:$0xf0] }
  0xb5   :  { %v2197_v13 = vpack.i.bf16 %v2520_v53, %v2518_v52  ;;  %v2018_v52 = vld [vmem:[#allocation7 + $0xa8] sm:$0xf] }
  0xb6   :  { %v2561_v15 = vadd.f32 %v627_v10, %v615_v11  ;;  %v2123_v10 = vld [vmem:[#allocation7 + $0xcc] sm:$0xf] }
  0xb8   :  { %636 = vrot.lane.b32.xlu2 %v2561_v15, %s2405_s18  ;;  %664 = vrot.lane.b32.xlu1 %v2561_v15, %s2410_s0  ;;  %v653_v27 = vsel %vm2666_vm6, %v2561_v15, 0.0  ;;  %s2422_s18 = smov 15  }
  0xb9   :  { %669 = vrot.lane.b32.xlu0 %v2561_v15, %s2411_s2 }
  0xbb   :  { %v616_v16 = vpop.f32.mrf.mxu2 }
  0xbc   :  { %v629_v18 = vpop.f32.mrf.mxu3  ;;  %v2010_v16 = vld [vmem:[#allocation7 + $0xa0] sm:$0xf] }
  0xbd   :  { %v2177_v18 = vpack.i.bf16 %v2574_v20, %v2576_v23 }
  0xc0   :  { %646 = vrot.lane.b32.xlu2 %v2561_v15, %s2412_s27  ;;  %659 = vrot.lane.b32.xlu1 %v2561_v15, %s2413_s28 }
  0xc1   :  { %654 = vrot.lane.b32.xlu0 %v2561_v15, %s2414_s29 }
  0xc8   :  { %641 = vrot.lane.b32.xlu1 %v2561_v15, %s2415_s30  ;;  %698 = vperm.xlu2 %2151, %v695_v41  }
  0xc9   :  { %631 = vrot.lane.b32.xlu0 %v2561_v15, %s2416_s10  ;;  %v2192_v15 = vpack.i.bf16 %v2500_v45, %v2498_v44  ;;  %v694_v45 = vld [vmem:[%s3597_s3] sm:$0x3] }
  0xd0   :  { %2158 = vrot.lane.b32.xlu1 %v2157_v30, %s2417_s11  ;;  %2163 = vrot.lane.b32.xlu2 %v2162_v7, %s2414_s29 }
  0xd1   :  { %2153 = vrot.lane.b32.xlu0 %v2152_v31, %s2417_s11  ;;  %v2212_v31 = vpack.i.bf16 %v2495_v37, %v2493_v36 }
  0xd8   :  { %2173 = vrot.lane.b32.xlu1 %v2172_v38, %s2418_s12  ;;  %2178 = vrot.lane.b32.xlu2 %v2177_v18, %s2418_s12  ;;  %v2120_v18 = vld [vmem:[#allocation7 + $0xac] sm:$0xf0] }
  0xd9   :  { %2168 = vrot.lane.b32.xlu0 %v2167_v39, %s2414_s29 }
  0xe0   :  { %2188 = vrot.lane.b32.xlu1 %v2187_v3, %s2420_s4  ;;  %2193 = vrot.lane.b32.xlu2 %v2192_v15, %s2409_s26  ;;  %v2044_v3 = vld [vmem:[#allocation7 + $0xf0] sm:$0xf0]  ;;  %v2115_v15 = vld [vmem:[#allocation7 + $0x8c] sm:$0xf] }
  0xe1   :  { %2183 = vrot.lane.b32.xlu0 %v2182_v6, %s2420_s4  ;;  %v2129_v6 = vld [vmem:[#allocation7 + $0xf4] sm:$0xf0]  ;;  %v2047_v7 = vor.u32 %v2126_v43, %v2044_v3  ;;  %v2748_v43 = vadd.s32 256, %v2580_v24 }
  0xe2   :  { %v2113_v3 = vld [vmem:[#allocation7 + $0x74] sm:$0xf0] }
  0xe3   :  { %928 = vmatpush.bf16.msrb.mxu2 %v2047_v7  ;;  %v86_v7 = vshra.s32 %v2580_v24, 4 }
  0xe8   :  { %2203 = vrot.lane.b32.xlu1 %v2202_v12, %s2412_s27  ;;  %2208 = vrot.lane.b32.xlu2 %v2207_v42, %s2412_s27  ;;  %v2036_v12 = vld [vmem:[#allocation7 + $0xd8] sm:$0xf0]  ;;  %v2110_v42 = vld [vmem:[#allocation7 + $0x64] sm:$0xf] }
  0xe9   :  { %2198 = vrot.lane.b32.xlu0 %v2197_v13, %s2409_s26  ;;  %v2039_v13 = vor.u32 %v2123_v10, %v2036_v12  ;;  %v1983_v58 = vor.u32 %v2110_v42, %v1980_v60  ;;  %v2107_v12 = vld [vmem:[#allocation7 + $0x4c] sm:$0xf] }
  0xf0   :  { %1032 = vrot.lane.b32.xlu1 %v2508_v48, %s2421_s15  ;;  %v2217_v48 = vpack.i.bf16 %v2505_v47, %v2503_v46  ;;  %v2124_v46 = vld [vmem:[#allocation7 + $0xcc] sm:$0xf0]  ;;  %v2122_v47 = vld [vmem:[#allocation7 + $0xc4] sm:$0xf] }
  0xf1   :  { %2213 = vrot.lane.b32.xlu0 %v2212_v31, %s2421_s15 }
  0xf2   :  { %2218 = vrot.lane.b32.xlu2 %v2217_v48, %s2422_s18 }
  0xf8   :  { %1034 = vrot.lane.b32.xlu1 %v2510_v49, %s2421_s15  ;;  %v2050_v49 = vld [vmem:[#allocation7 + $0xe8] sm:$0xf] }
  0xf9   :  { %1104 = vrot.lane.b32.xlu0 %v2528_v56, %s2422_s18  ;;  %v2127_v56 = vld [vmem:[#allocation7 + $0xec] sm:$0xf] }
  0xfa   :  { %1106 = vrot.lane.b32.xlu2 %v2530_v57, %s2422_s18  ;;  %v2055_v5 = vor.u32 %v2127_v56, %v2052_v9  ;;  %v1988_v56 = vld [vmem:[#allocation7 + $0x78] sm:$0xf0]  ;;  %v1962_v9 = vld [vmem:[#allocation7 + $0x40] sm:$0xf] }
 0x112   :  { %v637_v8 = vpop.permute.xlu2 %636 }
 0x113   :  { %v640_v32 = vsel %vm2674_vm8, %v637_v8, 0.0  ;;  %v2051_v8 = vor.u32 %v2129_v6, %v2050_v49  ;;  %v2111_v49 = vld [vmem:[#allocation7 + $0x6c] sm:$0xf] }
 0x114   :  { %v675_v38 = vrot.slane %v640_v32, 4  ;;  %v2002_v32 = vld [vmem:[#allocation7 + $0x88] sm:$0xf] }
 0x115   :  { %941 = vmatpush.bf16.msrb.mxu3 %v2051_v8  ;;  %v1987_v8 = vor.u32 %v2113_v3, %v1986_v61  ;;  %v3684_v61 = vmov 0 }
 0x11a   :  { %v647_v21 = vpop.permute.xlu2 %646 }
 0x11b   :  { %v650_v28 = vsel %vm2684_vm9, %v647_v21, 0.0  ;;  %vm3609_vm9 = vcmp.lt.s32.totalorder %v2580_v24, 112 }
 0x11c   :  { %v678_v34 = vrot.slane %v650_v28, 4  ;;  %v2114_v28 = vld [vmem:[#allocation7 + $0x84] sm:$0xf] }
 0x12a   :  { %v665_v62 = vpop.permute.xlu1 %664 }
 0x12b   :  { %v670_v63 = vpop.permute.xlu0 %669  ;;  %v668_v19 = vsel %vm2641_vm4, %v665_v62, 0.0  ;;  %v2026_v62 = vld [vmem:[#allocation7 + $0xc0] sm:$0xf] }
 0x12c   :  { %v673_v2 = vsel %vm305_vm11, %v670_v63, 0.0  ;;  %vm3605_vm11 = vcmask 1043456   ;;  %v684_v25 = vrot.slane %v668_v19, 4  ;;  %v2028_v63 = vld [vmem:[#allocation7 + $0xd0] sm:$0xf0]  ;;  %v2027_v57 = vor.u32 %v2124_v46, %v2026_v62 }
 0x12d   :  { %v693_v4 = vpack.c.bf16 %v673_v2, %v673_v2  ;;  %v2031_v59 = vor.u32 %v2122_v47, %v2028_v63  ;;  %v2034_v2 = vld [vmem:[#allocation7 + $0xc8] sm:$0xf]  ;;  %v2118_v19 = vld [vmem:[#allocation7 + $0xa4] sm:$0xf]  ;;  %v2108_v46 = vld [vmem:[#allocation7 + $0x4c] sm:$0xf0] }
 0x12e   :  { %916 = vmatpush.bf16.msrb.mxu1 %v2027_v57  ;;  %v2015_v20 = vor.u32 %v2118_v19, %v2012_v51  ;;  %v2106_v47 = vld [vmem:[#allocation7 + $0x44] sm:$0xf]  ;;  %v1963_v57 = vor.u32 %v2108_v46, %v1962_v9  ;;  %v1972_v19 = vld [vmem:[#allocation7 + $0x58] sm:$0xf0]  ;;  %v3692_v46 = vmov 0 }
 0x12f   :  { %v707_v11 = vsel %vm3606_vm15, %v693_v4, 0  ;;  %v2125_v4 = vld [vmem:[#allocation7 + $0xd4] sm:$0xf0]  ;;  %929 = vmatpush.bf16.msrb.mxu2 %v2031_v59  ;;  %v1964_v59 = vld [vmem:[#allocation7 + $0x50] sm:$0xf0] }
 0x130   :  { %714 = vmatpush.bf16.msrb.mxu0 %v707_v11  ;;  %v2035_v11 = vor.u32 %v2125_v4, %v2034_v2  ;;  %v1970_v2 = vld [vmem:[#allocation7 + $0x48] sm:$0xf]  ;;  %v88_v4 = vshra.s32 %v2748_v43, 4  ;;  %v1967_v10 = vor.u32 %v2106_v47, %v1964_v59 }
 0x132   :  { %v660_v50 = vpop.permute.xlu1 %659  ;;  %942 = vmatpush.bf16.msrb.mxu3 %v2035_v11  ;;  %v2109_v11 = vld [vmem:[#allocation7 + $0x54] sm:$0xf0] }
 0x133   :  { %v655_v53 = vpop.permute.xlu0 %654  ;;  %v663_v22 = vsel %vm2652_vm5, %v660_v50, 0.0  ;;  %v2011_v50 = vor.u32 %v2120_v18, %v2010_v16  ;;  %930 = vmatpush.bf16.msrb.mxu2 %v2015_v20  ;;  %v2762_v16 = vand.u32 15, %v86_v7  ;;  %v1971_v18 = vor.u32 %v2109_v11, %v1970_v2  ;;  %v2102_v20 = vld [vmem:[#allocation7 + $0x24] sm:$0xf] }
 0x134   :  { %v658_v23 = vsel %vm295_vm2, %v655_v53, 0.0  ;;  %v690_v30 = vsel %vm3605_vm11, %v663_v22, %v684_v25  ;;  %v2121_v53 = vld [vmem:[#allocation7 + $0xb4] sm:$0xf0]  ;;  %v2119_v22 = vld [vmem:[#allocation7 + $0xac] sm:$0xf]  ;;  %vm3608_vm5 = vcmp.lt.s32.totalorder %v2580_v24, 127 }
 0x135   :  { %v681_v26 = vrot.slane %v658_v23, 4  ;;  %v2019_v21 = vor.u32 %v2121_v53, %v2018_v52  ;;  %v2020_v23 = vld [vmem:[#allocation7 + $0xb8] sm:$0xf0]  ;;  %v1994_v25 = vld [vmem:[#allocation7 + $0x80] sm:$0xf]  ;;  %917 = vmatpush.bf16.msrb.mxu1 %v2011_v50  ;;  %v1975_v52 = vor.u32 %v2107_v12, %v1972_v19  ;;  %vm190_vm15 = vcmp.lt.s32.totalorder %v2762_v16, 16 }
 0x136   :  { %v1946_v50 = vld [vmem:[#allocation7 + $0x20] sm:$0xf]  ;;  %v2104_v53 = vld [vmem:[#allocation7 + $0x2c] sm:$0xf0]  ;;  %v3700_v19 = vmov 0 }
 0x137   :  { %v689_v29 = vsel %vm3605_vm11, %v653_v27, %v681_v26  ;;  %v2023_v26 = vor.u32 %v2119_v22, %v2020_v23  ;;  %v2116_v27 = vld [vmem:[#allocation7 + $0x8c] sm:$0xf0]  ;;  %943 = vmatpush.bf16.msrb.mxu3 %v2019_v21  ;;  %v1948_v21 = vld [vmem:[#allocation7 + $0x30] sm:$0xf0]  ;;  %v1947_v22 = vor.u32 %v2104_v53, %v1946_v50 }
 0x138   :  { %v692_v33 = vpack.c.bf16 %v690_v30, %v689_v29  ;;  %v1996_v29 = vld [vmem:[#allocation7 + $0x90] sm:$0xf0]  ;;  %v1995_v30 = vor.u32 %v2116_v27, %v1994_v25  ;;  %v1951_v23 = vor.u32 %v2102_v20, %v1948_v21  ;;  %v1954_v25 = vld [vmem:[#allocation7 + $0x28] sm:$0xf]  ;;  %v2103_v27 = vld [vmem:[#allocation7 + $0x2c] sm:$0xf] }
 0x139   :  { %v1999_v31 = vor.u32 %v2114_v28, %v1996_v29  ;;  %v2767_v28 = vand.u32 15, %v88_v4  ;;  %v3702_v21 = vmov 0 }
 0x13a   :  { %715 = vmatpush.bf16.msrb.mxu0 %v692_v33  ;;  %v642_v35 = vpop.permute.xlu1 %641  ;;  %v2117_v33 = vld [vmem:[#allocation7 + $0x94] sm:$0xf0]  ;;  %918 = vmatpush.bf16.msrb.mxu1 %v1995_v30 }
 0x13b   :  { %v645_v39 = vsel %vm286_vm3, %v642_v35, 0.0  ;;  %v632_v40 = vpop.permute.xlu0 %631  ;;  %v2004_v35 = vld [vmem:[#allocation7 + $0x98] sm:$0xf0]  ;;  %931 = vmatpush.bf16.msrb.mxu2 %v1999_v31  ;;  %v224_v60 = vadd.s32 1, %v2767_v28  ;;  %vm186_vm3 = vcmp.ge.s32.totalorder %v2762_v16, 0 }
 0x13c   :  { %v635_v36 = vsel %vm275_vm10, %v632_v40, 0.0  ;;  %v688_v37 = vsel %vm3605_vm11, %v645_v39, %v678_v34  ;;  %v2003_v34 = vor.u32 %v2117_v33, %v2002_v32  ;;  %v2738_v39 = vadd.s32 128, %v2580_v24  ;;  %v1978_v40 = vld [vmem:[#allocation7 + $0x60] sm:$0xf]  ;;  %v1956_v31 = vld [vmem:[#allocation7 + $0x38] sm:$0xf0] }
 0x13d   :  { %v687_v41 = vsel %vm3605_vm11, %v635_v36, %v675_v38  ;;  %v2007_v38 = vor.u32 %v2115_v15, %v2004_v35  ;;  %v2741_v36 = vadd.s32 384, %v2580_v24  ;;  %v222_v32 = vadd.s32 1, %v2762_v16 }
 0x13e   :  { %v691_v44 = vpack.c.bf16 %v688_v37, %v687_v41  ;;  %944 = vmatpush.bf16.msrb.mxu3 %v2003_v34  ;;  %v2112_v37 = vld [vmem:[#allocation7 + $0x6c] sm:$0xf0]  ;;  %v2743_v41 = vpop.permute.xlu2 %698  ;;  %v3616_v48 = vand.u32 15, %v2738_v39  ;;  %v1959_v33 = vor.u32 %v2103_v27, %v1956_v31  ;;  %vm188_vm11 = vcmp.ge.s32.totalorder %v2767_v28, 0 }
 0x13f   :  { %v89_v6 = vshra.s32 %v2741_v36, 4  ;;  %932 = vmatpush.bf16.msrb.mxu2 %v1983_v58  ;;  %vm226_vm12 = vcmp.ge.s32.totalorder %v222_v32, 0  ;;  %vm230_vm14 = vcmp.lt.s32.totalorder %v222_v32, 16  ;;  %v3709_v27 = vmov 0 }
 0x140   :  { %716 = vmatpush.bf16.msrb.mxu0 %v691_v44  ;;  %v87_v44 = vshra.s32 %v2738_v39, 4  ;;  %v2756_v63 = vadd.s32 1, %v3616_v48  ;;  %v1938_v48 = vld [vmem:[#allocation7 + $0x8] sm:$0xf] }
 0x142   :  { %v2752_v62 = vand.u32 15, %v87_v44  ;;  %945 = vmatpush.bf16.msrb.mxu3 %v1987_v8  ;;  %vm3607_vm1 = vcmp.lt.s32.totalorder %v2756_v63, 16  ;;  %v3617_v44 = vand.u32 15, %v2741_v36 }
 0x143   :  { %1927 = vmatmul.msk.bf16.vlgmr.msrb.gmra.mxu0 %vm3604_vm7, %v694_v45  ;;  %v1979_v45 = vor.u32 %v2112_v37, %v1978_v40  ;;  %933 = vmatpush.bf16.msrb.mxu2 %v1967_v10  ;;  %v3681_v40 = vmov 0  ;;  %v3615_v37 = vand.u32 15, %v2748_v43  ;;  %v2790_v42 = vpop.permute.xlu0 %2153  ;;  %v3697_v10 = vmov 0 }
 0x144   :  { %954 = vmatpush.bf16.msra.mxu0 %v2055_v5  ;;  %v1991_v5 = vor.u32 %v2111_v49, %v1988_v56  ;;  %vm187_vm13 = vcmp.ge.s32.totalorder %v2752_v62, 0  ;;  %vm191_vm0 = vcmp.lt.s32.totalorder %v2752_v62, 16  ;;  %v223_v29 = vadd.s32 1, %v2752_v62 }
 0x145   :  { %919 = vmatpush.bf16.msrb.mxu1 %v1979_v45  ;;  %vm2780_vm4 = vmand %vm187_vm13, %vm191_vm0  ;;  %v2788_v45 = vpop.permute.xlu1 %2158  ;;  %v2819_v7 = vadd.s32 1, %v3615_v37  ;;  %v2823_v8 = vadd.s32 1, %v3617_v44  ;;  %v3689_v56 = vmov 0  ;;  %v103_v9 = vadd.s32 4294967295, %v2752_v62 }
 0x146   :  { %v2764_v51 = vpop.permute.xlu2 %2163  ;;  %946 = vmatpush.bf16.msrb.mxu3 %v1971_v18  ;;  %v3682_v40 = vsel %vm2780_vm4, 4294967295, %v3681_v40  ;;  %vm227_vm6 = vcmp.ge.s32.totalorder %v223_v29, 0  ;;  %vm231_vm8 = vcmp.lt.s32.totalorder %v223_v29, 16  ;;  %vm2799_vm10 = vmand %vm2780_vm4, %vm3607_vm1  ;;  %v2160_v59 = vunpack.i.l.bf16 %v2788_v45 }
 0x147   :  { %v2166_v15 = vunpack.i.h.bf16 %v2764_v51  ;;  %v2165_v34 = vunpack.i.l.bf16 %v2764_v51  ;;  %934 = vmatpush.bf16.msrb.mxu2 %v1951_v23  ;;  %3683 = vst [vmem:[#allocation12_spill] sm:$0xff] %v3682_v40  ;;  %v3685_v61 = vsel %vm2799_vm10, 4294967295, %v3684_v61  ;;  %vm2813_vm7 = vmand %vm227_vm6, %vm231_vm8  ;;  %vm192_vm8 = vcmp.lt.s32.totalorder %v2767_v28, 16 }
 0x148   :  { %955 = vmatpush.bf16.msra.mxu0 %v2039_v13  ;;  %v2760_v13 = vand.u32 15, %v89_v6  ;;  %3686 = vst [vmem:[#allocation13_spill] sm:$0xff] %v3685_v61  ;;  %v2156_v2 = vunpack.i.h.bf16 %v2790_v42  ;;  %vm2850_vm6 = vmand %vm186_vm3, %vm190_vm15  ;;  %v3694_v62 = vmov 0  ;;  %v2161_v12 = vunpack.i.h.bf16 %v2788_v45 }
 0x149   :  { %920 = vmatpush.bf16.msrb.mxu1 %v1963_v57  ;;  %v1205_v58 = vsel %vm3608_vm5, %v2165_v34, %v2166_v15  ;;  %vm2828_vm5 = vmand %vm226_vm12, %vm230_vm14  ;;  %v3695_v62 = vsel %vm2850_vm6, 4294967295, %v3694_v62  ;;  %vm3708_vm15 = vcmp.ge.s32.totalorder %v224_v60, 0 }
 0x14a   :  { %v225_v35 = vadd.s32 1, %v2760_v13  ;;  %v3690_v56 = vsel %vm2828_vm5, 4294967295, %v3689_v56  ;;  %vm193_vm12 = vcmp.lt.s32.totalorder %v2760_v13, 16  ;;  %3696 = vst [vmem:[#allocation15_spill] sm:$0xff] %v3695_v62  ;;  %vm2862_vm14 = vmand %vm188_vm11, %vm192_vm8  ;;  %vm3699_vm3 = vcmp.ge.s32.totalorder %v2760_v13, 0 }
 0x14b   :  { %3691 = vst [vmem:[#allocation14_spill] sm:$0xff] %v3690_v56  ;;  %v3698_v10 = vsel %vm2862_vm14, 4294967295, %v3697_v10  ;;  %v2169_v50 = vpop.permute.xlu0 %2168  ;;  %vm3707_vm11 = vcmp.lt.s32.totalorder %v224_v60, 16 }
 0x14c   :  { %956 = vmatpush.bf16.msra.mxu0 %v2023_v26  ;;  %v2105_v26 = vld [vmem:[#allocation7 + $0x34] sm:$0xf0]  ;;  %vm229_vm13 = vcmp.ge.s32.totalorder %v225_v35, 0  ;;  %vm233_vm0 = vcmp.lt.s32.totalorder %v225_v35, 16  ;;  %v2170_v29 = vunpack.i.l.bf16 %v2169_v50 }
 0x14d   :  { %v1955_v30 = vor.u32 %v2105_v26, %v1954_v25  ;;  %921 = vmatpush.bf16.msrb.mxu1 %v1947_v22  ;;  %vm2838_vm2 = vmand %vm229_vm13, %vm233_vm0  ;;  %v2174_v18 = vpop.permute.xlu1 %2173  ;;  %v2171_v22 = vunpack.i.h.bf16 %v2169_v50  ;;  %v3727_v50 = vmov 0 }
 0x14e   :  { %v2179_v3 = vpop.permute.xlu2 %2178  ;;  %v3693_v46 = vsel %vm2838_vm2, 4294967295, %v3692_v46  ;;  %vm2872_vm13 = vmand %vm3699_vm3, %vm193_vm12  ;;  %v2176_v53 = vunpack.i.h.bf16 %v2174_v18  ;;  %v2175_v20 = vunpack.i.l.bf16 %v2174_v18  ;;  %vm3705_vm12 = vcmp.lt.s32.totalorder %v2580_v24, 111 }
 0x14f   :  { %947 = vmatpush.bf16.msrb.mxu3 %v1955_v30  ;;  %v2181_v47 = vunpack.i.h.bf16 %v2179_v3  ;;  %v2180_v57 = vunpack.i.l.bf16 %v2179_v3  ;;  %v3701_v19 = vsel %vm2872_vm13, 4294967295, %v3700_v19  ;;  %v2888_v23 = vsel %vm3705_vm12, %v2160_v59, %v2161_v12  ;;  %vm3706_vm3 = vmmov %vm3705_vm12 }
 0x150   :  { %957 = vmatpush.bf16.msra.mxu0 %v2007_v38  ;;  %v3620_v38 = vand.u32 15, %v2580_v24  ;;  %v2892_v25 = vsel %vm3706_vm3, %v2156_v2, %v2160_v59  ;;  %vm2898_vm0 = vmand %vm3708_vm15, %vm3707_vm11  ;;  %vm3714_vm3 = vcmp.lt.s32.totalorder %v2819_v7, 16  ;;  %vm3718_vm15 = vcmp.lt.s32.totalorder %v2580_v24, 127 }
 0x151   :  { %v1279_v4 = vsel %vm3609_vm9, %v2180_v57, %v2181_v47  ;;  %v3710_v27 = vsel %vm2898_vm0, 4294967295, %v3709_v27  ;;  %v1206_v35 = vsel %vm3718_vm15, %v2171_v22, %v2165_v34  ;;  %vm3722_vm11 = vcmp.lt.s32.totalorder %v2580_v24, 111 }
 0x152   :  { %v2811_v49 = vadd.s32 1, %v3620_v38  ;;  %v1291_v26 = vsel %vm2838_vm2, %v1279_v4, 0.0 }
 0x154   :  { %958 = vmatpush.bf16.msra.mxu0 %v1991_v5  ;;  %v1217_v5 = vsel %vm2799_vm10, %v1205_v58, 0.0  ;;  %vm3610_vm1 = vcmp.lt.s32.totalorder %v2811_v49, 16  ;;  %vm2912_vm10 = vmand %vm2862_vm14, %vm3714_vm3  ;;  %v3720_v58 = vmov 0 }
 0x155   :  { %v2867_v11 = vrot.slane %v1217_v5, 4  ;;  %vm2882_vm8 = vmand %vm2850_vm6, %vm3610_vm1  ;;  %vm3711_vm1 = vcmp.lt.s32.totalorder %v2580_v24, 112 }
 0x156   :  { %v3703_v21 = vsel %vm2882_vm8, 4294967295, %v3702_v21  ;;  %v1276_v30 = vsel %vm3711_vm1, %v2176_v53, %v2180_v57  ;;  %vm3712_vm12 = vmmov %vm3711_vm1  ;;  %v1216_v34 = vsel %vm2882_vm8, %v1206_v35, 0.0  ;;  %v2936_v3 = vpop.permute.xlu2 %2193  ;;  %v1930_v35 = vld [vmem:[#allocation7] sm:$0xf] }
 0x157   :  { %3704 = vst [vmem:[#allocation16_spill] sm:$0xff] %v3703_v21  ;;  %v1277_v31 = vsel %vm3712_vm12, %v2175_v20, %v2176_v53  ;;  %vm3713_vm9 = vmmov %vm3711_vm1  ;;  %v1290_v45 = vsel %vm2898_vm0, %v1276_v30, 0.0  ;;  %vm3719_vm1 = vcmp.lt.s32.totalorder %v2823_v8, 16  ;;  %v3614_v53 = vunpack.i.l.bf16 %v2936_v3 }
 0x158   :  { %959 = vmatpush.bf16.msra.mxu0 %v1975_v52  ;;  %v2155_v52 = vunpack.i.l.bf16 %v2790_v42  ;;  %v1278_v32 = vsel %vm3713_vm9, %v2181_v47, %v2175_v20  ;;  %v1289_v60 = vsel %vm2813_vm7, %v1277_v31, 0.0  ;;  %vm2930_vm9 = vmand %vm2872_vm13, %vm3719_vm1  ;;  %v2940_v47 = vrot.slane %v1291_v26, 4  ;;  %v2189_v31 = vpop.permute.xlu1 %2188 }
 0x159   :  { %v1288_v42 = vsel %vm2828_vm5, %v1278_v32, 0.0  ;;  %v3721_v58 = vsel %vm2930_vm9, 4294967295, %v3720_v58  ;;  %v2942_v57 = vrot.slane %v1290_v45, 4  ;;  %vm3723_vm12 = vmmov %vm3718_vm15  ;;  %vm3725_vm15 = vcmp.lt.s32.totalorder %v103_v9, 16  ;;  %v2184_v32 = vpop.permute.xlu0 %2183  ;;  %v2100_v45 = vld [vmem:[#allocation7 + $0xc] sm:$0xf0] }
 0x15a   :  { %v1313_v5 = vsel %vm3722_vm11, %v2155_v52, %v2156_v2  ;;  %v2944_v59 = vrot.slane %v1288_v42, 4  ;;  %v1204_v4 = vsel %vm3723_vm12, %v2166_v15, %v2170_v29  ;;  %vm3724_vm3 = vmmov %vm3723_vm12  ;;  %vm3726_vm1 = vcmp.ge.s32.totalorder %v103_v9, 0 }
 0x15b   :  { %v1207_v18 = vsel %vm3724_vm3, %v2170_v29, %v2171_v22  ;;  %vm2954_vm8 = vmand %vm3726_vm1, %vm3725_vm15  ;;  %v3613_v2 = vunpack.i.h.bf16 %v2936_v3  ;;  %v2960_v20 = vrot.slane %v1289_v60, 4  ;;  %v2962_v26 = vrot.slane %v1216_v34, 4 }
 0x15c   :  { %960 = vmatpush.bf16.msra.mxu0 %v1959_v33  ;;  %v3715_v33 = vmov 0  ;;  %v3728_v50 = vsel %vm2954_vm8, 4294967295, %v3727_v50  ;;  %v1218_v51 = vsel %vm2912_vm10, %v1204_v4, 0.0  ;;  %v1219_v15 = vsel %vm2930_vm9, %v1207_v18, 0.0  ;;  %v2098_v4 = vld [vmem:[#allocation7 + $0x4] sm:$0xf] }
 0x15d   :  { %v3716_v33 = vsel %vm2912_vm10, 4294967295, %v3715_v33  ;;  %v1314_v9 = vsel %vm3722_vm11, %v2161_v12, %v2155_v52  ;;  %v2970_v22 = vrot.slane %v1218_v51, 4  ;;  %v2972_v29 = vrot.slane %v1219_v15, 4  ;;  %v1932_v18 = vld [vmem:[#allocation7 + $0x10] sm:$0xf0] }
 0x15e   :  { %3717 = vst [vmem:[#allocation17_spill] sm:$0xff] %v3716_v33  ;;  %vm3729_vm12 = vcmp.lt.s32.totalorder %v2580_v24, 16  ;;  %vm3730_vm3 = vcmp.lt.s32.totalorder %v2811_v49, 16  ;;  %v3731_v12 = vmov 0  ;;  %v2191_v42 = vunpack.i.h.bf16 %v2189_v31 }
 0x15f   :  { %v1075_v30 = vsel %vm3729_vm12, %v3614_v53, %v3613_v2  ;;  %vm2984_vm15 = vmand %vm2828_vm5, %vm3730_vm3  ;;  %v2190_v60 = vunpack.i.l.bf16 %v2189_v31  ;;  %v2186_v34 = vunpack.i.h.bf16 %v2184_v32  ;;  %vm3733_vm1 = vcmp.lt.s32.totalorder %v2756_v63, 16 }
 0x160   :  { %v3732_v12 = vsel %vm2984_vm15, 4294967295, %v3731_v12  ;;  %v1086_v52 = vsel %vm2954_vm8, %v1075_v30, 0.0  ;;  %vm2994_vm11 = vmand %vm2813_vm7, %vm3733_vm1  ;;  %v3734_v51 = vmov 0  ;;  %v2185_v2 = vunpack.i.l.bf16 %v2184_v32  ;;  %v2101_v30 = vld [vmem:[#allocation7 + $0x14] sm:$0xf0] }
 0x161   :  { %v3735_v51 = vsel %vm2994_vm11, 4294967295, %v3734_v51  ;;  %v2998_v15 = vrot.slane %v1086_v52, 4  ;;  %v1931_v53 = vor.u32 %v2100_v45, %v1930_v35  ;;  %v1935_v37 = vor.u32 %v2098_v4, %v1932_v18  ;;  %v2099_v45 = vld [vmem:[#allocation7 + $0xc] sm:$0xf]  ;;  %v1940_v4 = vld [vmem:[#allocation7 + $0x18] sm:$0xf0] }
 0x162   :  { %vm3736_vm12 = vcmp.lt.s32.totalorder %v2819_v7, 16  ;;  %v3737_v31 = vmov 0  ;;  %vm3739_vm1 = vcmp.lt.s32.totalorder %v2580_v24, 113  ;;  %v1939_v32 = vor.u32 %v2101_v30, %v1938_v48 }
 0x163   :  { %vm3004_vm3 = vmand %vm2898_vm0, %vm3736_vm12  ;;  %v3010_v44 = vsel %vm3739_vm1, %v2190_v60, %v2191_v42  ;;  %v1324_v35 = vsel %vm2984_vm15, %v1314_v9, 0.0  ;;  %922 = vmatpush.bf16.msrb.mxu1 %v1931_v53  ;;  %935 = vmatpush.bf16.msrb.mxu2 %v1935_v37  ;;  %v1943_v30 = vor.u32 %v2099_v45, %v1940_v4  ;;  %v3745_v37 = vand.u32 15, %v2741_v36 }
 0x164   :  { %v3738_v31 = vsel %vm3004_vm3, 4294967295, %v3737_v31  ;;  %vm3740_vm10 = vmmov %vm3739_vm1  ;;  %v1400_v33 = vpack.c.bf16 %v1324_v35, %v1324_v35  ;;  %948 = vmatpush.bf16.msrb.mxu3 %v1939_v32  ;;  %v1326_v9 = vsel %vm3004_vm3, %v2892_v25, 0.0  ;;  %v3747_v45 = vand.u32 15, %v2738_v39 }
 0x165   :  { %v3014_v52 = vsel %vm3740_vm10, %v2186_v34, %v2190_v60  ;;  %vm3741_vm9 = vmmov %vm3739_vm1  ;;  %v1325_v60 = vsel %vm2994_vm11, %v1313_v5, 0.0  ;;  %vm3744_vm10 = vcmask 1041408   ;;  %v3038_v53 = vadd.s32 4294967295, %v3745_v37  ;;  %v2209_v5 = vpop.permute.xlu2 %2208  ;;  %961 = vmatpush.bf16.msra.mxu0 %v1943_v30 }
 0x166   :  { %v3020_v18 = vsel %vm3741_vm9, %v2185_v2, %v2186_v34  ;;  %vm3742_vm12 = vmmov %vm3739_vm1  ;;  %v1401_v48 = vpack.c.bf16 %v1325_v60, %v1325_v60  ;;  %v3743_v34 = vand.u32 15, %v2580_v24  ;;  %v2211_v25 = vunpack.i.h.bf16 %v2209_v5 }
 0x167   :  { %v3024_v38 = vsel %vm3742_vm12, %v2191_v42, %v2185_v2  ;;  %v1415_v2 = vsel %vm3744_vm10, %v1400_v33, 0  ;;  %v1402_v42 = vpack.c.bf16 %v1326_v9, %v1326_v9  ;;  %vm3746_vm1 = vmmov %vm3744_vm10  ;;  %v2210_v35 = vunpack.i.l.bf16 %v2209_v5  ;;  %v2204_v9 = vpop.permute.xlu1 %2203 }
 0x168   :  { %v3033_v21 = vadd.s32 4294967295, %v3743_v34  ;;  %1431 = vmatpush.bf16.msra.mxu1 %v1415_v2  ;;  %v1418_v32 = vsel %vm3746_vm1, %v1401_v48, 0  ;;  %v3044_v4 = vadd.s32 4294967295, %v3747_v45  ;;  %vm3748_vm12 = vmmov %vm3746_vm1  ;;  %vm3626_vm10 = vcmp.ge.s32.totalorder %v3038_v53, 0  ;;  %v2199_v48 = vpop.permute.xlu0 %2198 }
 0x169   :  { %1444 = vmatpush.bf16.msra.mxu2 %v1418_v32  ;;  %v1421_v33 = vsel %vm3748_vm12, %v1402_v42, 0  ;;  %v3749_v36 = vand.u32 15, %v2748_v43  ;;  %vm3750_vm1 = vcmp.lt.s32.totalorder %v2823_v8, 16  ;;  %vm3065_vm12 = vmand %vm2872_vm13, %vm3626_vm10  ;;  %v3753_v43 = vmov 0 }
 0x16a   :  { %vm3057_vm3 = vmand %vm2838_vm2, %vm3750_vm1  ;;  %1457 = vmatpush.bf16.msra.mxu3 %v1421_v33  ;;  %v3754_v43 = vsel %vm3065_vm12, 4294967295, %v3753_v43  ;;  %vm3756_vm9 = vcmp.lt.s32.totalorder %v2580_v24, 1  ;;  %vm3632_vm15 = vcmp.ge.s32.totalorder %v3044_v4, 0  ;;  %v2206_v34 = vunpack.i.h.bf16 %v2204_v9 }
 0x16b   :  { %v3050_v60 = vadd.s32 4294967295, %v3749_v36  ;;  %3755 = vst [vmem:[#allocation18_spill] sm:$0xff] %v3754_v43  ;;  %v1145_v30 = vsel %vm3756_vm9, %v2210_v35, %v2211_v25  ;;  %v2205_v2 = vunpack.i.l.bf16 %v2204_v9  ;;  %vm3757_vm11 = vcmp.ge.s32.totalorder %v3033_v21, 0  ;;  %vm3091_vm9 = vmand %vm2780_vm4, %vm3632_vm15 }
 0x16c   :  { %v1160_v42 = vsel %vm3065_vm12, %v1145_v30, 0.0  ;;  %vm3079_vm10 = vmand %vm2850_vm6, %vm3757_vm11  ;;  %v3758_v37 = vmov 0  ;;  %v102_v5 = vadd.s32 4294967295, %v2762_v16  ;;  %v104_v32 = vadd.s32 4294967295, %v2767_v28 }
 0x16d   :  { %v3759_v37 = vsel %vm3079_vm10, 4294967295, %v3758_v37  ;;  %v3085_v45 = vrot.slane %v1160_v42, 4  ;;  %v3761_v33 = vmov 0  ;;  %vm3764_vm1 = vcmp.lt.s32.totalorder %v2580_v24, 1 }
 0x16e   :  { %3760 = vst [vmem:[#allocation19_spill] sm:$0xff] %v3759_v37  ;;  %v3762_v33 = vsel %vm3091_vm9, 4294967295, %v3761_v33  ;;  %v1146_v36 = vsel %vm3764_vm1, %v2206_v34, %v2210_v35  ;;  %vm3765_vm11 = vmmov %vm3764_vm1  ;;  %vm3767_vm8 = vcmp.ge.s32.totalorder %v3050_v60, 0  ;;  %v3768_v28 = vmov 0 }
 0x16f   :  { %3763 = vst [vmem:[#allocation20_spill] sm:$0xff] %v3762_v33  ;;  %v1147_v9 = vsel %vm3765_vm11, %v2205_v2, %v2206_v34  ;;  %vm3766_vm12 = vmmov %vm3764_vm1  ;;  %v105_v42 = vadd.s32 4294967295, %v2760_v13  ;;  %vm106_vm1 = vcmp.ge.s32.totalorder %v102_v5, 0  ;;  %v3776_v13 = vmov 0 }
 0x170   :  { %v1148_v16 = vsel %vm3766_vm12, %v2211_v25, %v2205_v2  ;;  %vm3105_vm13 = vmand %vm2862_vm14, %vm3767_vm8  ;;  %v1158_v35 = vsel %vm3091_vm9, %v1147_v9, 0.0  ;;  %vm108_vm8 = vcmp.ge.s32.totalorder %v104_v32, 0  ;;  %vm3771_vm12 = vcmp.ge.s32.totalorder %v3033_v21, 0  ;;  %v2214_v56 = vpop.permute.xlu0 %2213 }
 0x171   :  { %v3769_v28 = vsel %vm3105_vm13, 4294967295, %v3768_v28  ;;  %v1157_v30 = vsel %vm3079_vm10, %v1148_v16, 0.0  ;;  %v1159_v25 = vsel %vm3105_vm13, %v1146_v36, 0.0  ;;  %v3118_v2 = vrot.slane %v1158_v35, 4  ;;  %vm3124_vm11 = vmand %vm2828_vm5, %vm3771_vm12  ;;  %v3138_v36 = vpop.permute.xlu2 %2218 }
 0x172   :  { %3770 = vst [vmem:[#allocation21_spill] sm:$0xff] %v3769_v28  ;;  %v3116_v34 = vrot.slane %v1157_v30, 4  ;;  %v3772_v16 = vmov 0  ;;  %v3128_v9 = vrot.slane %v1159_v25, 4  ;;  %vm110_vm10 = vcmp.lt.s32.totalorder %v102_v5, 16  ;;  %v1033_v28 = vpop.permute.xlu1 %1032 }
 0x173   :  { %v3773_v16 = vsel %vm3124_vm11, 4294967295, %v3772_v16  ;;  %vm112_vm9 = vcmp.lt.s32.totalorder %v104_v32, 16  ;;  %vm3775_vm13 = vcmp.ge.s32.totalorder %v3044_v4, 0  ;;  %vm113_vm2 = vcmp.lt.s32.totalorder %v105_v42, 16  ;;  %vm3140_vm12 = vmand %vm106_vm1, %vm110_vm10 }
 0x174   :  { %3774 = vst [vmem:[#allocation22_spill] sm:$0xff] %v3773_v16  ;;  %vm3134_vm14 = vmand %vm2813_vm7, %vm3775_vm13  ;;  %v3778_v30 = vmov 0  ;;  %v2201_v35 = vunpack.i.h.bf16 %v2199_v48  ;;  %v2200_v25 = vunpack.i.l.bf16 %v2199_v48  ;;  %v1327_v5 = vsel %vm3057_vm3, %v2888_v23, 0.0 }
 0x175   :  { %v3777_v13 = vsel %vm3134_vm14, 4294967295, %v3776_v13  ;;  %v3779_v30 = vsel %vm3140_vm12, 4294967295, %v3778_v30  ;;  %vm3147_vm15 = vmand %vm108_vm8, %vm112_vm9  ;;  %v1403_v37 = vpack.c.bf16 %v1327_v5, %v1327_v5  ;;  %v1180_v43 = vsel %vm2850_vm6, %v2523_v54, 0.0 }
 0x176   :  { %v1252_v33 = vsel %vm3124_vm11, %v3024_v38, 0.0  ;;  %v1181_v48 = vsel %vm2780_vm4, %v2525_v55, 0.0  ;;  %vm3782_vm13 = vcmp.ge.s32.totalorder %v105_v42, 0  ;;  %v3783_v23 = vmov 0 }
 0x177   :  { %vm3161_vm10 = vmand %vm3782_vm13, %vm113_vm2  ;;  %v3785_v5 = vunpack.i.l.bf16 %v2936_v3  ;;  %vm3786_vm9 = vcmp.lt.s32.totalorder %v2580_v24, 16  ;;  %v3788_v38 = vunpack.i.h.bf16 %v2936_v3  ;;  %vm3790_vm11 = vcmask 1043456  }
 0x178   :  { %v3784_v23 = vsel %vm3161_vm10, 4294967295, %v3783_v23  ;;  %vm3787_vm1 = vmmov %vm3786_vm9  ;;  %v1384_v42 = vsel %vm3790_vm11, %v1180_v43, %v2962_v26  ;;  %vm3791_vm2 = vcmask 1041408   ;;  %vm3792_vm13 = vcmp.ge.s32.totalorder %v3050_v60, 0 }
 0x179   :  { %v1076_v54 = vsel %vm3786_vm9, %v2201_v35, %v3785_v5  ;;  %v1073_v16 = vsel %vm3787_vm1, %v2200_v25, %v2201_v35  ;;  %vm3789_vm8 = vmmov %vm3787_vm1  ;;  %v1424_v61 = vsel %vm3791_vm2, %v1403_v37, 0  ;;  %v3793_v3 = vmov 0 }
 0x17a   :  { %v1074_v55 = vsel %vm3789_vm8, %v3788_v38, %v2200_v25  ;;  %v1085_v62 = vsel %vm3140_vm12, %v1076_v54, 0.0  ;;  %v1088_v5 = vsel %vm3161_vm10, %v1073_v16, 0.0  ;;  %vm3188_vm9 = vmand %vm2898_vm0, %vm3792_vm13  ;;  %1470 = vmatpush.bf16.msrb.mxu0 %v1424_v61  ;;  %v1388_v25 = vsel %vm3790_vm11, %v1252_v33, %v2944_v59 }
 0x17b   :  { %v1087_v40 = vsel %vm3147_vm15, %v1074_v55, 0.0  ;;  %v3794_v3 = vsel %vm3188_vm9, 4294967295, %v3793_v3  ;;  %v1332_v26 = vrot.slane %v1085_v62, 4  ;;  %v3194_v35 = vrot.slane %v1088_v5, 4  ;;  %vm3799_vm13 = vmmov %vm3790_vm11 }
 0x17c   :  { %v3192_v43 = vrot.slane %v1087_v40, 4  ;;  %vm3795_vm1 = vcmp.ge.s32.totalorder %v3038_v53, 0  ;;  %vm3796_vm8 = vnez %v3693_v46  ;;  %v3797_v37 = vmov 0 }
 0x17d   :  { %vm3202_vm2 = vmand %vm3796_vm8, %vm3795_vm1  ;;  %v1396_v16 = vpack.c.bf16 %v1388_v25, %v1384_v42  ;;  %v1253_v40 = vsel %vm3134_vm14, %v3020_v18, 0.0  ;;  %v1385_v62 = vsel %vm3799_vm13, %v1181_v48, %v2867_v11  ;;  %vm3800_vm0 = vnez %v3698_v10  ;;  %v1035_v42 = vpop.permute.xlu1 %1034 }
 0x17e   :  { %v3798_v37 = vsel %vm3202_vm2, 4294967295, %v3797_v37  ;;  %v1182_v61 = vsel %vm3800_vm0, %v2548_v0, 0.0  ;;  %vm3801_vm11 = vcmp.lt.s32.totalorder %v2811_v49, 16  ;;  %v3802_v59 = vmov 0  ;;  %vm3804_vm8 = vmmov %vm3799_vm13 }
 0x17f   :  { %vm3218_vm1 = vmand %vm3140_vm12, %vm3801_vm11  ;;  %v1389_v33 = vsel %vm3804_vm8, %v1253_v40, %v2960_v20  ;;  %v1254_v18 = vsel %vm3188_vm9, %v3014_v52, 0.0  ;;  %vm3806_vm14 = vcmp.ge.s32.totalorder %v3033_v21, 0  ;;  %v3807_v0 = vmov 0  ;;  %1432 = vmatpush.bf16.msra.mxu1 %v1396_v16 }
 0x180   :  { %v3803_v59 = vsel %vm3218_vm1, 4294967295, %v3802_v59  ;;  %vm3805_vm13 = vmmov %vm3804_vm8  ;;  %v1397_v49 = vpack.c.bf16 %v1389_v33, %v1385_v62  ;;  %v1390_v20 = vsel %vm3804_vm8, %v1254_v18, %v2942_v57  ;;  %v2221_v52 = vunpack.i.h.bf16 %v3138_v36  ;;  %v1405_v62 = vld [vmem:[%s3600_s6] sm:$0xf] }
 0x181   :  { %v1386_v11 = vsel %vm3805_vm13, %v1182_v61, %v2970_v22  ;;  %vm3234_vm11 = vmand %vm3140_vm12, %vm3806_vm14  ;;  %v2220_v48 = vunpack.i.l.bf16 %v3138_v36  ;;  %v1107_v22 = vpop.permute.xlu2 %1106  ;;  %vm3809_vm13 = vcmp.ge.s32.totalorder %v3038_v53, 0  ;;  %v3810_v21 = vmov 0  ;;  %1408 = vperm.xlu0 %2222, %v1405_v62  }
 0x182   :  { %v3808_v0 = vsel %vm3234_vm11, 4294967295, %v3807_v0  ;;  %vm3246_vm5 = vmand %vm3161_vm10, %vm3809_vm13  ;;  %v1398_v54 = vpack.c.bf16 %v1390_v20, %v1386_v11  ;;  %v2216_v38 = vunpack.i.h.bf16 %v2214_v56  ;;  %v2215_v55 = vunpack.i.l.bf16 %v2214_v56  ;;  %1445 = vmatpush.bf16.msra.mxu2 %v1397_v49 }
 0x183   :  { %v3811_v21 = vsel %vm3246_vm5, 4294967295, %v3810_v21  ;;  %vm3812_vm8 = vcmp.lt.s32.totalorder %v2819_v7, 16  ;;  %v3813_v57 = vmov 0  ;;  %vm3815_vm9 = vcmp.lt.s32.totalorder %v2580_v24, 15 }
 0x184   :  { %vm3255_vm12 = vmand %vm3147_vm15, %vm3812_vm8  ;;  %v1111_v53 = vsel %vm3815_vm9, %v2220_v48, %v2221_v52  ;;  %vm3816_vm13 = vnez %v3701_v19  ;;  %v1255_v56 = vsel %vm3202_vm2, %v3010_v44, 0.0  ;;  %vm3818_vm8 = vcmp.lt.s32.totalorder %v2823_v8, 16  ;;  %1458 = vmatpush.bf16.msra.mxu3 %v1398_v54  ;;  %v1105_v8 = vpop.permute.xlu0 %1104 }
 0x185   :  { %v3814_v57 = vsel %vm3255_vm12, 4294967295, %v3813_v57  ;;  %v1183_v36 = vsel %vm3816_vm13, %v2550_v1, 0.0  ;;  %vm3817_vm14 = vmmov %vm3815_vm9  ;;  %v3819_v5 = vmov 0  ;;  %vm3821_vm9 = vcmp.lt.s32.totalorder %v2580_v24, 17 }
 0x186   :  { %v1112_v7 = vsel %vm3817_vm14, %v1107_v22, %v2220_v48  ;;  %vm3273_vm0 = vmand %vm3161_vm10, %vm3818_vm8  ;;  %v1038_v1 = vsel %vm3821_vm9, %v2216_v38, %v1033_v28  ;;  %vm3823_vm2 = vcmask 1043456   ;;  %vm3825_vm6 = vcmp.ge.s32.totalorder %v3044_v4, 0 }
 0x187   :  { %v3820_v5 = vsel %vm3273_vm0, 4294967295, %v3819_v5  ;;  %vm3822_vm13 = vmmov %vm3821_vm9  ;;  %v1387_v44 = vsel %vm3823_vm2, %v1183_v36, %v2972_v29  ;;  %vm3826_vm8 = vnez %v3728_v50  ;;  %v1121_v29 = vsel %vm3218_vm1, %v1112_v7, 0.0 }
 0x188   :  { %v1039_v25 = vsel %vm3822_vm13, %v2215_v55, %v2216_v38  ;;  %vm3824_vm14 = vmmov %vm3823_vm2  ;;  %vm3839_vm1 = vcmask 1043456  }
 0x189   :  { %v1391_v16 = vsel %vm3824_vm14, %v1255_v56, %v2940_v47  ;;  %vm3289_vm10 = vmand %vm3826_vm8, %vm3825_vm6  ;;  %vm3834_vm14 = vcmp.lt.s32.totalorder %v2580_v24, 15 }
 0x18a   :  { %v1399_v61 = vpack.c.bf16 %v1391_v16, %v1387_v44  ;;  %vm3829_vm2 = vmmov %vm3821_vm9  ;;  %vm3831_vm9 = vcmp.lt.s32.totalorder %v2756_v63, 16 }
 0x18b   :  { %v1037_v47 = vsel %vm3829_vm2, %v1033_v28, %v1035_v42  ;;  %vm3830_vm13 = vmmov %vm3829_vm2  ;;  %v1109_v28 = vsel %vm3834_vm14, %v1105_v8, %v1107_v22 }
 0x18c   :  { %v1040_v4 = vsel %vm3830_vm13, %v1035_v42, %v2215_v55  ;;  %vm3306_vm6 = vmand %vm3826_vm8, %vm3831_vm9  ;;  %v1052_v11 = vsel %vm3246_vm5, %v1037_v47, 0.0  ;;  %vm3836_vm13 = vcmp.ge.s32.totalorder %v3050_v60, 0  ;;  %1471 = vmatpush.bf16.msrb.mxu0 %v1399_v61  ;;  %v1124_v48 = vsel %vm3273_vm0, %v1109_v28, 0.0 }
 0x18d   :  { %v1049_v18 = vsel %vm3234_vm11, %v1040_v4, 0.0  ;;  %vm3835_vm2 = vmmov %vm3834_vm14  ;;  %v1050_v60 = vsel %vm3289_vm10, %v1039_v25, 0.0  ;;  %v1122_v38 = vsel %vm3306_vm6, %v1111_v53, 0.0 }
 0x18e   :  { %v1110_v49 = vsel %vm3835_vm2, %v2221_v52, %v1105_v8  ;;  %vm3322_vm9 = vmand %vm3147_vm15, %vm3836_vm13  ;;  %v1376_v22 = vsel %vm3839_vm1, %v1049_v18, %v1332_v26 }
 0x18f   :  { %v1123_v20 = vsel %vm3255_vm12, %v1110_v49, 0.0  ;;  %vm3840_vm14 = vmmov %vm3839_vm1  ;;  %v1051_v55 = vsel %vm3322_vm9, %v1038_v1, 0.0 }
 0x190   :  { %v1380_v52 = vsel %vm3840_vm14, %v1121_v29, %v3116_v34  ;;  %vm3841_vm2 = vmmov %vm3839_vm1  ;;  %v1378_v26 = vsel %vm3839_vm1, %v1051_v55, %v3192_v43 }
 0x191   :  { %v1392_v54 = vpack.c.bf16 %v1380_v52, %v1376_v22  ;;  %v1377_v36 = vsel %vm3841_vm2, %v1050_v60, %v2998_v15  ;;  %vm3842_vm13 = vmmov %vm3839_vm1 }
 0x192   :  { %v1381_v56 = vsel %vm3842_vm13, %v1122_v38, %v3118_v2  ;;  %vm3843_vm14 = vmmov %vm3839_vm1 }
 0x193   :  { %v1382_v34 = vsel %vm3843_vm14, %v1123_v20, %v3128_v9  ;;  %1433 = vmatpush.bf16.msra.mxu1 %v1392_v54  ;;  %v1393_v7 = vpack.c.bf16 %v1381_v56, %v1377_v36  ;;  %vm3844_vm0 = vmmov %vm3839_vm1 }
 0x194   :  { %v1394_v42 = vpack.c.bf16 %v1382_v34, %v1378_v26  ;;  %v1379_v53 = vsel %vm3844_vm0, %v1052_v11, %v3194_v35  ;;  %vm3845_vm11 = vmmov %vm3844_vm0  ;;  %v1404_v35 = vld [vmem:[%s3599_s5] sm:$0x3]  ;;  %vm3846_vm0 = vcmask 293888  }
 0x195   :  { %v1383_v1 = vsel %vm3845_vm11, %v1124_v48, %v3085_v45  ;;  %1446 = vmatpush.bf16.msra.mxu2 %v1393_v7  ;;  %vm3847_vm11 = vmmov %vm3846_vm0 }
 0x196   :  { %v1395_v25 = vpack.c.bf16 %v1383_v1, %v1379_v53  ;;  %1459 = vmatpush.bf16.msra.mxu3 %v1394_v42  ;;  %vm3848_vm2 = vmmov %vm3846_vm0 }
 0x197   :  { %vm3849_vm13 = vmmov %vm3846_vm0 }
 0x198   :  { %1472 = vmatpush.bf16.msrb.mxu0 %v1395_v25  ;;  %vm3850_vm14 = vmmov %vm3839_vm1 }
 0x1c0   :  { %v718_v15 = vpop.f32.mrf.mxu0 }
 0x1c1   :  { %v719_v2 = vadd.f32 %v718_v15, %v2743_v41 }
 0x1c3   :  { %v722_v43 = vpack.c.bf16 %v719_v2, %v719_v2 }
 0x1c5   :  { %923 = vmatmul.bf16.vlgmr.msrb.gmra.mxu1 %v722_v43  ;;  %936 = vmatmul.bf16.vlgmr.msrb.gmra.mxu2 %v722_v43 }
 0x1c6   :  { %949 = vmatmul.bf16.vlgmr.msrb.gmra.mxu3 %v722_v43  ;;  %962 = vmatmul.bf16.vlgmr.msra.gmra.mxu0 %v722_v43 }
 0x1c8   :  { %v720_v9 = vpop.f32.mrf.mxu0 }
 0x1d5   :  { %2059 = vmatmul.msk.bf16.vlgmr.msra.gmra.mxu2 %vm3846_vm0, %v1404_v35  ;;  %2058 = vmatmul.msk.bf16.vlgmr.msra.gmra.mxu1 %vm3847_vm11, %v1404_v35 }
 0x1d6   :  { %2060 = vmatmul.msk.bf16.vlgmr.msra.gmra.mxu3 %vm3848_vm2, %v1404_v35  ;;  %2061 = vmatmul.msk.bf16.vlgmr.msrb.gmra.mxu0 %vm3849_vm13, %v1404_v35 }
 0x242   :  { %v924_v45 = vpop.f32.mrf.mxu1 }
 0x243   :  { %v963_v41 = vpop.f32.mrf.mxu0 }
 0x244   :  { %v972_v44 = vrot.slane %v963_v41, 4 }
 0x248   :  { %v937_v16 = vpop.f32.mrf.mxu2 }
 0x249   :  { %v971_v8 = vrot.slane %v937_v16, 4  ;;  %v950_v62 = vpop.f32.mrf.mxu3 }
 0x24a   :  { %v974_v61 = vsel %vm3839_vm1, %v950_v62, %v972_v44  ;;  %v926_v29 = vpop.f32.mrf.mxu1 }
 0x24b   :  { %v973_v47 = vsel %vm3850_vm14, %v924_v45, %v971_v8  ;;  %v978_v4 = vadd.f32 %v974_v61, %v2488_v17  ;;  %v965_v18 = vpop.f32.mrf.mxu0 }
 0x24c   :  { %v977_v11 = vadd.f32 %v973_v47, %v2485_v14  ;;  %v1409_v18 = vpop.permute.xlu0 %1408 }
 0x24d   :  { %v2057_v28 = vmul.f32 -1.442695, %v978_v4 }
 0x24e   :  { %v2056_v49 = vmul.f32 -1.442695, %v977_v11 }
 0x24f   :  { %2293 = vpow2.f32 %v2057_v28 }
 0x250   :  { %2295 = vpow2.f32 %v2056_v49  ;;  %v939_v20 = vpop.f32.mrf.mxu2 }
 0x251   :  { %v952_v48 = vpop.f32.mrf.mxu3 }
 0x252   :  { %v1435_v22 = vpop.f32.mrf.mxu1 }
 0x253   :  { %v1474_v52 = vpop.f32.mrf.mxu0 }
 0x254   :  { %v1475_v28 = vadd.f32 %v1474_v52, %v1409_v18 }
 0x255   :  { %v2294_v54 = vpop.eup %2293 }
 0x256   :  { %v2296_v60 = vpop.eup %2295  ;;  %v986_v38 = vadd.f32 1.0, %v2294_v54 }
 0x257   :  { %v985_v55 = vadd.f32 1.0, %v2296_v60 }
 0x258   :  { %2297 = vrcp.f32 %v986_v38  ;;  %v1448_v36 = vpop.f32.mrf.mxu2  ;;  %v1013_v2 = vand.u32 2147483648, %v986_v38  ;;  %v1011_v35 = vand.u32 2147483647, %v986_v38  ;;  %vm1007_vm2 = vweird.f32 %v986_v38 }
 0x259   :  { %2299 = vrcp.f32 %v985_v55  ;;  %v1461_v56 = vpop.f32.mrf.mxu3  ;;  %v998_v43 = vand.u32 2147483648, %v985_v55  ;;  %v996_v41 = vand.u32 2147483647, %v985_v55  ;;  %vm992_vm13 = vweird.f32 %v985_v55 }
 0x25a   :  { %v1437_v17 = vpop.f32.mrf.mxu1  ;;  %v1014_v8 = vor.u32 1.1754944e-38, %v1013_v2  ;;  %vm1012_vm5 = vcmp.eq.f32.partialorder %v1011_v35, 8.507059e+37  ;;  %v1462_v11 = vadd.f32 %v1461_v56, %v1409_v18 }
 0x25b   :  { %v1476_v26 = vpop.f32.mrf.mxu0  ;;  %v999_v62 = vor.u32 1.1754944e-38, %v998_v43  ;;  %vm997_vm12 = vcmp.eq.f32.partialorder %v996_v41, 8.507059e+37 }
 0x25c   :  { %v1436_v26 = vadd.f32 %v1435_v22, %v1409_v18 }
 0x25e   :  { %v2298_v34 = vpop.eup %2297 }
 0x25f   :  { %v2300_v14 = vpop.eup %2299  ;;  %v1003_v7 = vmul.f32 %v2298_v34, %v986_v38  ;;  %vm1008_vm0 = vweird.f32 %v2298_v34  ;;  %v1449_v38 = vadd.f32 %v1448_v36, %v1409_v18 }
 0x260   :  { %v988_v42 = vmul.f32 %v2300_v14, %v985_v55  ;;  %v1450_v53 = vpop.f32.mrf.mxu2  ;;  %vm993_vm11 = vweird.f32 %v2300_v14  ;;  %vm1009_vm1 = vmor %vm1007_vm2, %vm1008_vm0  ;;  %vm3856_vm2 = vnez %v3735_v51 }
 0x261   :  { %v1004_v1 = vsub.f32 1.0, %v1003_v7  ;;  %v1463_v25 = vpop.f32.mrf.mxu3  ;;  %vm994_vm14 = vmor %vm992_vm13, %vm993_vm11  ;;  %vm3857_vm13 = vnez %v3732_v12 }
 0x262   :  { %v989_v15 = vsub.f32 1.0, %v988_v42 }
 0x263   :  { %v1005_v9 = vmul.f32 %v2298_v34, %v1004_v1 }
 0x264   :  { %v990_v45 = vmul.f32 %v2300_v14, %v989_v15 }
 0x265   :  { %v1006_v44 = vadd.f32 %v2298_v34, %v1005_v9 }
 0x266   :  { %v991_v16 = vadd.f32 %v2300_v14, %v990_v45 }
 0x267   :  { %v1010_v61 = vsel %vm1009_vm1, %v2298_v34, %v1006_v44  ;;  %vm3858_vm1 = vnez %v3738_v31 }
 0x268   :  { %v995_v29 = vsel %vm994_vm14, %v2300_v14, %v991_v16  ;;  %v1015_v47 = vsel %vm1012_vm5, %v1014_v8, %v1010_v61  ;;  %v1704_v14 = vld [vmem:[%s3602_s8] sm:$0xff]  ;;  %vm3851_vm5 = vcmp.lt.s32.totalorder %v2580_v24, 111 }
 0x269   :  { %v1000_v4 = vsel %vm997_vm12, %v999_v62, %v995_v29  ;;  %1482 = vst [vmem:[#allocation1 + $0x10] ss:$2 sm:$0xff] %v1015_v47  ;;  %vm3852_vm12 = vcmask 1041408   ;;  %vm3853_vm0 = vmmov %vm3851_vm5 }
 0x26a   :  { %1480 = vst [vmem:[#allocation1] ss:$2 sm:$0xff] %v1000_v4  ;;  %vm3855_vm11 = vmmov %vm3853_vm0 }
 0x26b   :  { %vm3859_vm14 = vmmov %vm3852_vm12 }
 0x270   :  { %v1485_v49 = vld.sshfl [vmem:[#allocation1 + $0x10] sm:$0xff pattern:$0x75316420]  ;;  %v1486_v20 = vld.sshfl [vmem:[#allocation1 + $0x18] sm:$0xff pattern:$0x75316420] }
 0x271   :  { %v3363_v48 = vmul.f32 %v1485_v49, %v1462_v11  ;;  %v3365_v54 = vmul.f32 %v1486_v20, %v1475_v28  ;;  %v1484_v60 = vld.sshfl [vmem:[#allocation1 + $0x8] sm:$0xff pattern:$0x75316420]  ;;  %v1483_v17 = vld.sshfl [vmem:[#allocation1] sm:$0xff pattern:$0x75316420] }
 0x272   :  { %v3371_v34 = vmul.f32 %v1484_v60, %v1449_v38  ;;  %v3375_v52 = vmul.f32 %v1483_v17, %v1436_v26 }
 0x273   :  { %1499 = vrot.lane.b32.xlu0 %v3363_v48, %s2421_s15  ;;  %v2228_v55 = vpack.i.bf16 %v3365_v54, %v3363_v48 }
 0x274   :  { %v2253_v56 = vpack.i.bf16 %v3363_v48, %v3371_v34  ;;  %v2238_v36 = vpack.i.bf16 %v3375_v52, %v3365_v54  ;;  %v2278_v22 = vpack.i.bf16 %v3371_v34, %v3375_v52 }
 0x275   :  { %2229 = vrot.lane.b32.xlu1 %v2228_v55, %s2412_s27  ;;  %2224 = vrot.lane.b32.xlu2 %v2228_v55, %s2409_s26 }
 0x27b   :  { %2254 = vrot.lane.b32.xlu0 %v2253_v56, %s2418_s12 }
 0x27d   :  { %2234 = vrot.lane.b32.xlu1 %v2253_v56, %s2417_s11  ;;  %2239 = vrot.lane.b32.xlu2 %v2238_v36, %s2417_s11 }
 0x283   :  { %2269 = vrot.lane.b32.xlu0 %v2238_v36, %s2420_s4 }
 0x285   :  { %2244 = vrot.lane.b32.xlu1 %v2253_v56, %s2414_s29  ;;  %2249 = vrot.lane.b32.xlu2 %v2238_v36, %s2414_s29 }
 0x28b   :  { %2279 = vrot.lane.b32.xlu0 %v2278_v22, %s2412_s27 }
 0x28d   :  { %2259 = vrot.lane.b32.xlu1 %v2238_v36, %s2418_s12  ;;  %2264 = vrot.lane.b32.xlu2 %v2253_v56, %s2420_s4 }
 0x293   :  { %1501 = vrot.lane.b32.xlu0 %v3365_v54, %s2421_s15 }
 0x295   :  { %2274 = vrot.lane.b32.xlu1 %v2278_v22, %s2409_s26  ;;  %2284 = vrot.lane.b32.xlu2 %v2278_v22, %s2421_s15 }
 0x29d   :  { %2289 = vrot.lane.b32.xlu1 %v2278_v22, %s2422_s18  ;;  %1531 = vrot.lane.b32.xlu2 %v3363_v48, %s2422_s18 }
 0x2a5   :  { %1533 = vrot.lane.b32.xlu1 %v3365_v54, %s2422_s18  ;;  %1707 = vperm.xlu2 %2151, %v1704_v14  }
 0x2cf   :  { %v3404_v7 = vpop.permute.xlu2 %2224 }
 0x2d7   :  { %v2240_v42 = vpop.permute.xlu2 %2239 }
 0x2d8   :  { %v2242_v53 = vunpack.i.h.bf16 %v2240_v42  ;;  %v2241_v1 = vunpack.i.l.bf16 %v2240_v42 }
 0x2da   :  { %v1622_v25 = vsel %vm3851_vm5, %v2241_v1, %v2242_v53  ;;  %vm3860_vm5 = vmmov %vm3852_vm12 }
 0x2db   :  { %v1626_v15 = vsel %vm3057_vm3, %v1622_v25, 0.0  ;;  %vm3854_vm3 = vmmov %vm3853_vm0 }
 0x2dc   :  { %v1702_v2 = vpack.c.bf16 %v1626_v15, %v1626_v15 }
 0x2de   :  { %v1723_v43 = vsel %vm3852_vm12, %v1702_v2, 0  ;;  %vm3861_vm12 = vcmp.lt.s32.totalorder %v2580_v24, 112 }
 0x2df   :  { %1769 = vmatpush.bf16.msra.mxu0 %v1723_v43  ;;  %v2250_v45 = vpop.permute.xlu2 %2249 }
 0x2e0   :  { %v2252_v62 = vunpack.i.h.bf16 %v2250_v45  ;;  %v2251_v28 = vunpack.i.l.bf16 %v2250_v45 }
 0x2e5   :  { %v3411_v9 = vpop.permute.xlu0 %1499 }
 0x2e7   :  { %v3413_v35 = vpop.permute.xlu1 %2229  ;;  %v2265_v38 = vpop.permute.xlu2 %2264 }
 0x2e8   :  { %v2267_v22 = vunpack.i.h.bf16 %v2265_v38  ;;  %v2266_v31 = vunpack.i.l.bf16 %v2265_v38 }
 0x2ed   :  { %v3415_v41 = vpop.permute.xlu0 %2254 }
 0x2ee   :  { %v2257_v47 = vunpack.i.h.bf16 %v3415_v41  ;;  %v2256_v4 = vunpack.i.l.bf16 %v3415_v41  ;;  %v3869_v41 = vld [vmem:[#allocation13_spill] sm:$0xff] }
 0x2ef   :  { %v2235_v44 = vpop.permute.xlu1 %2234 }
 0x2f0   :  { %v2237_v16 = vunpack.i.h.bf16 %v2235_v44  ;;  %v2236_v8 = vunpack.i.l.bf16 %v2235_v44  ;;  %v1604_v56 = vsel %vm3861_vm12, %v2256_v4, %v2257_v47  ;;  %vm3874_vm12 = vnez %v3698_v10 }
 0x2f2   :  { %v1619_v61 = vsel %vm3853_vm0, %v2237_v16, %v2241_v1  ;;  %v1620_v39 = vsel %vm3854_vm3, %v2236_v8, %v2237_v16  ;;  %v1621_v29 = vsel %vm3855_vm11, %v2242_v53, %v2236_v8  ;;  %vm3862_vm0 = vmmov %vm3860_vm5  ;;  %vm3863_vm3 = vcmp.lt.s32.totalorder %v2580_v24, 127 }
 0x2f3   :  { %v1624_v18 = vsel %vm3856_vm2, %v1620_v39, 0.0  ;;  %v1623_v11 = vsel %vm3857_vm13, %v1621_v29, 0.0  ;;  %v1625_v60 = vsel %vm3858_vm1, %v1619_v61, 0.0  ;;  %v1574_v36 = vsel %vm3863_vm3, %v2251_v28, %v2252_v62  ;;  %vm3865_vm2 = vmmov %vm3863_vm3  ;;  %v3872_v29 = vld [vmem:[#allocation15_spill] sm:$0xff] }
 0x2f4   :  { %v1700_v49 = vpack.c.bf16 %v1624_v18, %v1624_v18  ;;  %v1699_v20 = vpack.c.bf16 %v1623_v11, %v1623_v11  ;;  %v1701_v55 = vpack.c.bf16 %v1625_v60, %v1625_v60  ;;  %v1608_v1 = vsel %vm2813_vm7, %v1604_v56, 0.0  ;;  %vm3867_vm1 = vmmov %vm3865_vm2 }
 0x2f5   :  { %v2270_v42 = vpop.permute.xlu0 %2269  ;;  %vm3864_vm11 = vnez %v3721_v58  ;;  %vm3866_vm13 = vcmp.lt.s32.totalorder %v2580_v24, 113  ;;  %v1668_v6 = vrot.slane %v1608_v1, 4  ;;  %v1560_v39 = vsel %vm2780_vm4, %v3371_v34, 0.0  ;;  %v3878_v34 = vld [vmem:[#allocation17_spill] sm:$0xff] }
 0x2f6   :  { %v1717_v17 = vsel %vm3859_vm14, %v1700_v49, 0  ;;  %v1714_v26 = vsel %vm3860_vm5, %v1699_v20, 0  ;;  %v1720_v12 = vsel %vm3862_vm0, %v1701_v55, 0  ;;  %v1578_v25 = vsel %vm3864_vm11, %v1574_v36, 0.0  ;;  %vm3868_vm14 = vmmov %vm3867_vm1  ;;  %v3876_v20 = vld [vmem:[#allocation16_spill] sm:$0xff] }
 0x2f7   :  { %v2245_v51 = vpop.permute.xlu1 %2244  ;;  %1743 = vmatpush.bf16.msrb.mxu2 %v1717_v17  ;;  %1730 = vmatpush.bf16.msrb.mxu1 %v1714_v26  ;;  %v1588_v2 = vsel %vm3866_vm13, %v2266_v31, %v2267_v22  ;;  %vm3870_vm5 = vnez %v3869_v41  ;;  %v2272_v16 = vunpack.i.h.bf16 %v2270_v42  ;;  %v2271_v8 = vunpack.i.l.bf16 %v2270_v42  ;;  %v3886_v42 = vld [vmem:[#allocation14_spill] sm:$0xff] }
 0x2f8   :  { %v2247_v14 = vunpack.i.h.bf16 %v2245_v51  ;;  %1756 = vmatpush.bf16.msrb.mxu3 %v1720_v12  ;;  %v2246_v53 = vunpack.i.l.bf16 %v2245_v51  ;;  %vm3873_vm7 = vnez %v3872_v29  ;;  %v1561_v11 = vsel %vm3874_vm12, %v3363_v48, 0.0  ;;  %v3892_v41 = vld [vmem:[#allocation22_spill] sm:$0xff] }
 0x2f9   :  { %v1559_v18 = vsel %vm3873_vm7, %v3375_v52, 0.0  ;;  %vm3875_vm0 = vnez %v3701_v19  ;;  %v2226_v49 = vunpack.i.l.bf16 %v3404_v7  ;;  %vm3877_vm3 = vnez %v3876_v20 }
 0x2fa   :  { %v1572_v15 = vsel %vm3865_vm2, %v2246_v53, %v2247_v14  ;;  %v1571_v43 = vsel %vm3867_vm1, %v2247_v14, %v2251_v28  ;;  %v1573_v45 = vsel %vm3868_vm14, %v2252_v62, %v2246_v53  ;;  %v1562_v62 = vsel %vm3875_vm0, %v3365_v54, 0.0  ;;  %vm3882_vm1 = vmmov %vm3866_vm13 }
 0x2fb   :  { %v1576_v44 = vsel %vm3870_vm5, %v1572_v15, 0.0  ;;  %v2227_v28 = vunpack.i.h.bf16 %v3404_v7  ;;  %v1575_v60 = vsel %vm3877_vm3, %v1573_v45, 0.0  ;;  %vm3879_vm4 = vnez %v3878_v34  ;;  %vm3884_vm5 = vmmov %vm3882_vm1 }
 0x2fc   :  { %v1656_v58 = vrot.slane %v1576_v44, 4  ;;  %v1577_v38 = vsel %vm3879_vm4, %v1571_v43, 0.0  ;;  %v1658_v52 = vrot.slane %v1578_v25, 4  ;;  %vm3880_vm11 = vnez %v3777_v13 }
 0x2fd   :  { %v1592_v10 = vsel %vm3880_vm11, %v1588_v2, 0.0  ;;  %vm3881_vm2 = vcmask 1043456   ;;  %v1587_v19 = vsel %vm3866_vm13, %v2267_v22, %v2271_v8  ;;  %v1589_v54 = vsel %vm3882_vm1, %v2272_v16, %v2266_v31  ;;  %v2280_v14 = vpop.permute.xlu0 %2279 }
 0x2fe   :  { %v1684_v48 = vsel %vm3881_vm2, %v1560_v39, %v1656_v58  ;;  %vm3883_vm14 = vmmov %vm3881_vm2  ;;  %v1590_v51 = vsel %vm3884_vm5, %v2271_v8, %v2272_v16  ;;  %v1655_v12 = vrot.slane %v1575_v60, 4  ;;  %v1657_v36 = vrot.slane %v1577_v38, 4  ;;  %v2285_v8 = vpop.permute.xlu2 %2284 }
 0x2ff   :  { %v2260_v55 = vpop.permute.xlu1 %2259  ;;  %v1688_v56 = vsel %vm3883_vm14, %v1592_v10, %v1668_v6  ;;  %vm3885_vm7 = vcmp.lt.s32.totalorder %v2580_v24, 112  ;;  %vm3887_vm12 = vnez %v3886_v42  ;;  %vm3890_vm4 = vnez %v3710_v27  ;;  %vm3895_vm14 = vmmov %vm3881_vm2 }
 0x300   :  { %v2262_v17 = vunpack.i.h.bf16 %v2260_v55  ;;  %v2261_v26 = vunpack.i.l.bf16 %v2260_v55  ;;  %vm3888_vm0 = vmmov %vm3885_vm7  ;;  %v1696_v1 = vpack.c.bf16 %v1688_v56, %v1684_v48  ;;  %vm3891_vm11 = vnez %v3693_v46 }
 0x301   :  { %vm3889_vm3 = vmmov %vm3888_vm0  ;;  %vm3893_vm13 = vnez %v3892_v41  ;;  %vm3894_vm1 = vnez %v3794_v3  ;;  %v2282_v6 = vunpack.i.h.bf16 %v2280_v14  ;;  %v1683_v16 = vsel %vm3895_vm14, %v1559_v18, %v1655_v12  ;;  %v3909_v12 = vld [vmem:[#allocation21_spill] sm:$0xff] }
 0x302   :  { %v1605_v13 = vsel %vm3885_vm7, %v2262_v17, %v2256_v4  ;;  %v1603_v22 = vsel %vm3888_vm0, %v2257_v47, %v2261_v26  ;;  %v1606_v31 = vsel %vm3889_vm3, %v2261_v26, %v2262_v17  ;;  %v1686_v4 = vsel %vm3881_vm2, %v1562_v62, %v1658_v52  ;;  %1744 = vmatpush.bf16.msrb.mxu2 %v1696_v1  ;;  %vm3896_vm5 = vmmov %vm3881_vm2 }
 0x303   :  { %v1607_v53 = vsel %vm3887_vm12, %v1605_v13, 0.0  ;;  %v1609_v15 = vsel %vm3890_vm4, %v1603_v22, 0.0  ;;  %v1610_v2 = vsel %vm3891_vm11, %v1606_v31, 0.0  ;;  %v1591_v44 = vsel %vm3893_vm13, %v1589_v54, 0.0  ;;  %vm3898_vm12 = vmmov %vm3881_vm2 }
 0x304   :  { %v1667_v25 = vrot.slane %v1607_v53, 4  ;;  %v1669_v43 = vrot.slane %v1609_v15, 4  ;;  %v1670_v45 = vrot.slane %v1610_v2, 4  ;;  %v1593_v47 = vsel %vm3894_vm1, %v1587_v19, 0.0  ;;  %vm3899_vm0 = vmmov %vm3881_vm2 }
 0x305   :  { %vm3897_vm7 = vnez %v3798_v37  ;;  %v2281_v58 = vunpack.i.l.bf16 %v2280_v14  ;;  %v1685_v29 = vsel %vm3898_vm12, %v1561_v11, %v1657_v36  ;;  %vm3900_vm3 = vmmov %vm3899_vm0  ;;  %v2231_v18 = vunpack.i.l.bf16 %v3413_v35  ;;  %v1502_v14 = vpop.permute.xlu0 %1501 }
 0x306   :  { %v1687_v27 = vsel %vm3896_vm5, %v1591_v44, %v1667_v25  ;;  %v1594_v46 = vsel %vm3897_vm7, %v1590_v51, 0.0  ;;  %v1689_v62 = vsel %vm3899_vm0, %v1593_v47, %v1669_v43  ;;  %v2287_v55 = vunpack.i.h.bf16 %v2285_v8  ;;  %v1532_v1 = vpop.permute.xlu2 %1531 }
 0x307   :  { %v2275_v61 = vpop.permute.xlu1 %2274  ;;  %v1695_v39 = vpack.c.bf16 %v1687_v27, %v1683_v16  ;;  %v1697_v3 = vpack.c.bf16 %v1689_v62, %v1685_v29  ;;  %v1690_v34 = vsel %vm3900_vm3, %v1594_v46, %v1670_v45  ;;  %v2286_v37 = vunpack.i.l.bf16 %v2285_v8  ;;  %v3925_v27 = vld [vmem:[#allocation18_spill] sm:$0xff]  ;;  %v3927_v46 = vld [vmem:[#allocation19_spill] sm:$0xff]  ;;  %v1703_v62 = vld [vmem:[%s3601_s7] sm:$0xf]  ;;  %s2423_s7 = smov [#allocation8]  }
 0x308   :  { %v2277_v20 = vunpack.i.h.bf16 %v2275_v61  ;;  %v2276_v60 = vunpack.i.l.bf16 %v2275_v61  ;;  %v1698_v38 = vpack.c.bf16 %v1690_v34, %v1686_v4  ;;  %vm3901_vm4 = vcmp.lt.s32.totalorder %v2580_v24, 16  ;;  %s1786_s1 = sshll.u32 %s2423_s7, 4  ;;  %s1787_s1 = int_to_ptr.vmem [resolvable:$true] %s1786_s1 }
 0x309   :  { %1731 = vmatpush.bf16.msrb.mxu1 %v1695_v39  ;;  %vm3902_vm11 = vmmov %vm3901_vm4  ;;  %1757 = vmatpush.bf16.msrb.mxu3 %v1697_v3  ;;  %vm3904_vm13 = vcmp.lt.s32.totalorder %v2580_v24, 1  ;;  %v2232_v19 = vunpack.i.h.bf16 %v3413_v35  ;;  %vm3906_vm14 = vcmp.lt.s32.totalorder %v2580_v24, 17  ;;  %vm3908_vm7 = vnez %v3784_v23  ;;  %v3911_v35 = vld [vmem:[#allocation20_spill] sm:$0xff] }
 0x30a   :  { %v1520_v52 = vsel %vm3901_vm4, %v2277_v20, %v2226_v49  ;;  %v1521_v17 = vsel %vm3902_vm11, %v2276_v60, %v2277_v20  ;;  %1770 = vmatpush.bf16.msra.mxu0 %v1698_v38  ;;  %vm3903_vm2 = vmmov %vm3901_vm4  ;;  %v1552_v10 = vsel %vm3904_vm13, %v2282_v6, %v2231_v18  ;;  %v1504_v56 = vsel %vm3906_vm14, %v2287_v55, %v3411_v9 }
 0x30b   :  { %v1519_v11 = vsel %vm3903_vm2, %v2226_v49, %v2227_v28  ;;  %vm3905_vm1 = vmmov %vm3904_vm13  ;;  %v1525_v54 = vsel %vm3147_vm15, %v1520_v52, 0.0  ;;  %v1524_v26 = vsel %vm3826_vm8, %v1521_v17, 0.0  ;;  %vm3910_vm12 = vnez %v3909_v12 }
 0x30c   :  { %v1553_v48 = vsel %vm3905_vm1, %v2281_v58, %v2282_v6  ;;  %vm3907_vm5 = vmmov %vm3906_vm14  ;;  %v1526_v51 = vsel %vm3908_vm7, %v1519_v11, 0.0  ;;  %v1557_v36 = vsel %vm3910_vm12, %v1552_v10, 0.0  ;;  %vm3912_vm0 = vnez %v3911_v35 }
 0x30d   :  { %v1505_v49 = vsel %vm3907_vm5, %v2286_v37, %v2287_v55  ;;  %v1556_v32 = vsel %vm3912_vm0, %v1553_v48, 0.0  ;;  %vm3913_vm15 = vmmov %vm3903_vm2  ;;  %v1633_v42 = vrot.slane %v1525_v54, 4  ;;  %v1632_v53 = vrot.slane %v1524_v26, 4 }
 0x30e   :  { %v1522_v50 = vsel %vm3913_vm15, %v2227_v28, %v2276_v60  ;;  %vm3914_vm8 = vmmov %vm3905_vm1  ;;  %v1508_v15 = vsel %vm3289_vm10, %v1505_v49, 0.0  ;;  %v1509_v7 = vsel %vm3322_vm9, %v1504_v56, 0.0  ;;  %v1645_v28 = vrot.slane %v1557_v36, 4 }
 0x30f   :  { %v2290_v13 = vpop.permute.xlu1 %2289  ;;  %v1551_v23 = vsel %vm3914_vm8, %v2231_v18, %v2232_v19  ;;  %vm3915_vm3 = vmmov %vm3905_vm1  ;;  %v1644_v2 = vrot.slane %v1556_v32, 4  ;;  %vm3916_vm4 = vcmp.lt.s32.totalorder %v2580_v24, 15  ;;  %vm3919_vm13 = vnez %v3779_v30 }
 0x310   :  { %v2292_v22 = vunpack.i.h.bf16 %v2290_v13  ;;  %v2291_v31 = vunpack.i.l.bf16 %v2290_v13  ;;  %v1554_v25 = vsel %vm3915_vm3, %v2232_v19, %v2281_v58  ;;  %vm3917_vm11 = vmmov %vm3916_vm4  ;;  %v1523_v41 = vsel %vm3919_vm13, %v1522_v50, 0.0 }
 0x311   :  { %vm3918_vm2 = vmmov %vm3907_vm5  ;;  %vm3920_vm10 = vnez %v3814_v57  ;;  %vm3921_vm9 = vcmask 1043456   ;;  %vm3926_vm7 = vnez %v3925_v27  ;;  %vm3928_vm12 = vnez %v3927_v46 }
 0x312   :  { %v1536_v4 = vsel %vm3916_vm4, %v2292_v22, %v1532_v1  ;;  %v1537_v43 = vsel %vm3917_vm11, %v2291_v31, %v2292_v22  ;;  %v1503_v45 = vsel %vm3918_vm2, %v3411_v9, %v1502_v14  ;;  %v1676_v44 = vsel %vm3921_vm9, %v1508_v15, %v1632_v53  ;;  %vm3922_vm1 = vmmov %vm3921_vm9 }
 0x313   :  { %v1540_v40 = vsel %vm3306_vm6, %v1537_v43, 0.0  ;;  %v1541_v63 = vsel %vm3920_vm10, %v1536_v4, 0.0  ;;  %vm3923_vm14 = vmmov %vm3922_vm1  ;;  %v1558_v9 = vsel %vm3926_vm7, %v1551_v23, 0.0  ;;  %v1555_v30 = vsel %vm3928_vm12, %v1554_v25, 0.0 }
 0x314   :  { %v1680_v47 = vsel %vm3922_vm1, %v1540_v40, %v1644_v2  ;;  %v1677_v6 = vsel %vm3923_vm14, %v1509_v7, %v1633_v42  ;;  %vm3924_vm5 = vmmov %vm3922_vm1  ;;  %vm3930_vm0 = vnez %v3811_v21  ;;  %v1631_v61 = vrot.slane %v1523_v41, 4 }
 0x315   :  { %v1681_v16 = vsel %vm3924_vm5, %v1541_v63, %v1645_v28  ;;  %v1692_v8 = vpack.c.bf16 %v1680_v47, %v1676_v44  ;;  %vm3929_vm6 = vmmov %vm3918_vm2  ;;  %v1510_v58 = vsel %vm3930_vm0, %v1503_v45, 0.0  ;;  %v1634_v39 = vrot.slane %v1526_v51, 4 }
 0x316   :  { %v1693_v33 = vpack.c.bf16 %v1681_v16, %v1677_v6  ;;  %v1506_v57 = vsel %vm3929_vm6, %v1502_v14, %v2286_v37  ;;  %v1646_v20 = vrot.slane %v1558_v9, 4  ;;  %v1643_v60 = vrot.slane %v1555_v30, 4  ;;  %vm3931_vm15 = vmmov %vm3916_vm4 }
 0x317   :  { %v1534_v29 = vpop.permute.xlu1 %1533  ;;  %1745 = vmatpush.bf16.msrb.mxu2 %v1692_v8  ;;  %vm3932_vm8 = vmmov %vm3916_vm4  ;;  %vm3933_vm3 = vnez %v3808_v0  ;;  %vm3934_vm4 = vnez %v3803_v59  ;;  %vm3935_vm11 = vnez %v3820_v5  ;;  %vm3937_vm13 = vcmask 293888   ;;  %v1708_v59 = vpop.permute.xlu2 %1707 }
 0x318   :  { %1758 = vmatpush.bf16.msrb.mxu3 %v1693_v33  ;;  %v1535_v3 = vsel %vm3931_vm15, %v1532_v1, %v1534_v29  ;;  %v1538_v34 = vsel %vm3932_vm8, %v1534_v29, %v2291_v31  ;;  %v1507_v21 = vsel %vm3933_vm3, %v1506_v57, 0.0  ;;  %vm3936_vm2 = vmmov %vm3922_vm1 }
 0x319   :  { %v1539_v18 = vsel %vm3934_vm4, %v1538_v34, 0.0  ;;  %v1542_v38 = vsel %vm3935_vm11, %v1535_v3, 0.0  ;;  %v1678_v55 = vsel %vm3936_vm2, %v1510_v58, %v1634_v39  ;;  %vm3938_vm10 = vmmov %vm3937_vm13 }
 0x31a   :  { %2063 = vmatmul.msk.bf16.vlgmr.msrb.gmra.mxu2 %vm3937_vm13, %v1703_v62  ;;  %vm3939_vm9 = vmmov %vm3922_vm1  ;;  %v1679_v24 = vsel %vm3922_vm1, %v1539_v18, %v1643_v60 }
 0x31b   :  { %2064 = vmatmul.msk.bf16.vlgmr.msrb.gmra.mxu3 %vm3938_vm10, %v1703_v62  ;;  %v1675_v37 = vsel %vm3939_vm9, %v1507_v21, %v1631_v61  ;;  %vm3940_vm14 = vmmov %vm3922_vm1 }
 0x31c   :  { %v1682_v52 = vsel %vm3940_vm14, %v1542_v38, %v1646_v20  ;;  %v1691_v0 = vpack.c.bf16 %v1679_v24, %v1675_v37  ;;  %vm3941_vm5 = vmmov %vm3938_vm10 }
 0x31d   :  { %v1694_v17 = vpack.c.bf16 %v1682_v52, %v1678_v55  ;;  %vm3942_vm7 = vmmov %vm3941_vm5 }
 0x31e   :  { %1732 = vmatpush.bf16.msrb.mxu1 %v1691_v0 }
 0x31f   :  { %1771 = vmatpush.bf16.msra.mxu0 %v1694_v17 }
 0x321   :  { %2062 = vmatmul.msk.bf16.vlgmr.msrb.gmra.mxu1 %vm3941_vm5, %v1703_v62 }
 0x322   :  { %2065 = vmatmul.msk.bf16.vlgmr.msra.gmra.mxu0 %vm3942_vm7, %v1703_v62 }
 0x39d   :  { %v1747_v11 = vpop.f32.mrf.mxu2 }
 0x39e   :  { %v1734_v5 = vpop.f32.mrf.mxu1  ;;  %v1748_v48 = vadd.f32 %v1747_v11, %v1708_v59  ;;  %v1760_v19 = vpop.f32.mrf.mxu3 }
 0x39f   :  { %v1735_v10 = vadd.f32 %v1734_v5, %v1708_v59  ;;  %v1773_v54 = vpop.f32.mrf.mxu0  ;;  %v1761_v26 = vadd.f32 %v1760_v19, %v1708_v59 }
 0x3a0   :  { %v1774_v56 = vadd.f32 %v1773_v54, %v1708_v59  ;;  %1778 = vst [vmem:[#allocation8 + $0x8] sm:$0xff] %v1748_v48 }
 0x3a1   :  { %1777 = vst [vmem:[#allocation8] sm:$0xff] %v1735_v10 }
 0x3a2   :  { %1779 = vst [vmem:[#allocation8 + $0x10] sm:$0xff] %v1761_v26 }
 0x3a3   :  { %1780 = vst [vmem:[#allocation8 + $0x18] sm:$0xff] %v1774_v56 }
 0x3a4   :  { %1791 = dma.vmem_to_hbm [thread:$0]  %s1787_s1, 512, %s1789_s25, [#allocation4]  }
 0x3a5   :  { %v1749_v51 = vpop.f32.mrf.mxu2 }
 0x3a6   :  { %v1736_v49 = vpop.f32.mrf.mxu1  ;;  %v1762_v12 = vpop.f32.mrf.mxu3 }
 0x3a7   :  { %v1775_v36 = vpop.f32.mrf.mxu0 }
 0x3a8   :  { %2401 = dma.done.wait [#allocation4], 512  }
 0x3a9   :  { %2402 = vsyncadd [#allocation4], 4294966784 }
 0x3aa   :  { %1796 = vsyncpa [#allocation3], 1 }
 0x3ab   :  { %1797 = vsyncpa [#allocation6], 1 }
 0x3ac   :  { %1798 = vsyncpa [#allocation4], 1 }

</bundles_post_ra>
